<compile_context>
chip_gen: v7x
topology: tpu7x:2x2x1
jax: 0.10.0
libtpu: 0.0.40
codegen_flags: <defaults>
</compile_context>

<pallas_src>
import functools

import jax
import jax.numpy as jnp
from jax.experimental import pallas as pl
from jax.experimental.pallas import tpu as pltpu


# ---------------------------------------------------------------------------
# Stage 1: RMSNorm + router logits, tiled over the batch dimension.
# ---------------------------------------------------------------------------
def rmsnorm_router_kernel(x_ref, nw_ref, rw_ref, rb_ref, xn_ref, logits_ref, *, eps):
    x = x_ref[...].astype(jnp.float32)                                   # (TB, d)
    inv_rms = jax.lax.rsqrt(jnp.mean(x * x, axis=-1, keepdims=True) + eps)
    xn = nw_ref[...] * (x * inv_rms)                                     # (TB, d) f32
    xn_ref[...] = xn.astype(xn_ref.dtype)                                # bf16 out
    logits = jnp.dot(xn, rw_ref[...], preferred_element_type=jnp.float32)
    logits_ref[...] = logits + rb_ref[...]


# ---------------------------------------------------------------------------
# Stage 2: grouped expert MLP.
#
# Grid step s processes token tile mtile[s] (rows sorted by expert) with expert gid[s]'s
# weights.  Each sorted row belongs to exactly one expert; the step whose expert matches
# writes it (row mask from the expert's [gstart, gend) extent), so revisits of the same
# output tile by different experts never double-count.  Consecutive steps with the same
# expert / tile reuse the resident weight / activation / output blocks (no re-DMA).
# ---------------------------------------------------------------------------
def grouped_expert_kernel(gid_ref, mtile_ref, gstart_ref, gend_ref,      # scalar prefetch (SMEM)
                          sp_ref, xs_ref, w1_ref, b1_ref, w2_ref, b2_ref,
                          ys_ref, *, tm):
    s = pl.program_id(0)
    g = gid_ref[s]
    row0 = mtile_ref[s] * tm
    g_lo = gstart_ref[g]
    g_hi = gend_ref[g]

    x = xs_ref[...]                                                      # (tm, d)  bf16
    h = jnp.dot(x, w1_ref[0], preferred_element_type=jnp.float32) + b1_ref[0]   # (tm, h) f32
    h = h * jax.nn.sigmoid(h)                                            # SiLU (EUP), f32
    y = jnp.dot(h.astype(w2_ref.dtype), w2_ref[0],
                preferred_element_type=jnp.float32) + b2_ref[0]          # (tm, d) f32
    y = y * sp_ref[...]                                                  # routing probability

    # Fast path: tile fully owned by this expert -> plain store, no output read/select.
    full_tile = (g_lo <= row0) & (g_hi >= row0 + tm)

    @pl.when(full_tile)
    def _():
        ys_ref[...] = y

    @pl.when(jnp.logical_not(full_tile))
    def _():
        rows = row0 + jax.lax.broadcasted_iota(jnp.int32, (tm, 1), 0)
        row_mask = (rows >= g_lo) & (rows < g_hi)                        # (tm, 1)
        ys_ref[...] = jnp.where(row_mask, y, ys_ref[...])                # masked write of owned rows


def _pick_batch_tile(b):
    for t in (256, 128, 64, 32, 16):
        if b % t == 0:
            return t
    return b


# ---------------------------------------------------------------------------
# Wrapper
# ---------------------------------------------------------------------------
def moe_layer(x, params, *, top_k=2, eps=1e-10, tm=128, compute_dtype=jnp.bfloat16):
    B, d = x.shape
    E, _, H = params["w1"].shape

    # ---------------- Stage 1: RMSNorm + router logits (Pallas) ----------------
    tb = _pick_batch_tile(B)
    nw2 = params["norm_w"].reshape(1, d).astype(jnp.float32)
    rw = params["router_w"].astype(jnp.float32)
    rb2 = params["router_b"].reshape(1, E).astype(jnp.float32)

    xn, logits = pl.pallas_call(
        functools.partial(rmsnorm_router_kernel, eps=eps),
        grid=(B // tb,),
        in_specs=(
            pl.BlockSpec((tb, d), lambda i: (i, 0)),
            pl.BlockSpec((1, d), lambda i: (0, 0)),
            pl.BlockSpec((d, E), lambda i: (0, 0)),
            pl.BlockSpec((1, E), lambda i: (0, 0)),
        ),
        out_specs=(
            pl.BlockSpec((tb, d), lambda i: (i, 0)),
            pl.BlockSpec((tb, E), lambda i: (i, 0)),
        ),
        out_shape=(jax.ShapeDtypeStruct((B, d), compute_dtype),
                   jax.ShapeDtypeStruct((B, E), jnp.float32)),
        compiler_params=pltpu.CompilerParams(dimension_semantics=("parallel",)),
    )(x, nw2, rw, rb2)

    # ---------------- Routing + grouping metadata (plain JAX glue) ----------------
    # TODO(synk): top-k selection, argsort-by-expert and the token permutation are
    # data-dependent reorderings kept in plain JAX (as in MegaBlocks); the FLOP-heavy
    # expert MLPs run in the Pallas grouped-matmul kernel below.
    top_vals, top_idx = jax.lax.top_k(logits, top_k)
    top_probs = jax.nn.softmax(top_vals, axis=-1)

    T = B * top_k
    flat_e = top_idx.reshape(-1).astype(jnp.int32)
    flat_p = top_probs.reshape(-1).astype(jnp.float32)
    flat_tok = jnp.arange(T, dtype=jnp.int32) // top_k

    order = jnp.argsort(flat_e)                    # group (token, k) pairs by expert id
    se = flat_e[order]
    sp = flat_p[order]
    stok = flat_tok[order]

    tm = max(16, (tm // 16) * 16)
    num_tiles = -(-T // tm)
    T_pad = num_tiles * tm
    pad = T_pad - T
    if pad:
        se = jnp.concatenate([se, jnp.full((pad,), E - 1, jnp.int32)])      # pad rows -> last group
        sp = jnp.concatenate([sp, jnp.zeros((pad,), jnp.float32)])          # prob 0 => no contribution
        stok = jnp.concatenate([stok, jnp.zeros((pad,), jnp.int32)])

    # Per-expert extents [gstart, gend) in the sorted row order.
    group_sizes = jnp.bincount(se, length=E).astype(jnp.int32)
    gend = jnp.cumsum(group_sizes).astype(jnp.int32)
    gstart = (gend - group_sizes).astype(jnp.int32)

    # Work schedule: one step per (expert, token-tile) pair that overlaps; a tile shared
    # by two experts is visited once per expert.  Static upper bound on the step count.
    t_first = gstart // tm
    t_last = (gend + tm - 1) // tm
    tiles_per_group = jnp.where(group_sizes > 0, t_last - t_first, 0).astype(jnp.int32)
    num_steps = num_tiles + E - 1

    w_end = jnp.cumsum(tiles_per_group).astype(jnp.int32)
    w_start = (w_end - tiles_per_group).astype(jnp.int32)
    steps = jnp.arange(num_steps, dtype=jnp.int32)
    gid = jnp.minimum(jnp.sum(w_end[None, :] <= steps[:, None], axis=1), E - 1).astype(jnp.int32)
    mtile = jnp.clip(t_first[gid] + (steps - w_start[gid]), 0, num_tiles - 1).astype(jnp.int32)
    # (Padding steps repeat the last (expert, tile) pair; their row mask makes them no-ops.)

    # Sorted activations / probabilities.
    xs = xn[stok]                                  # (T_pad, d) bf16 gather
    sp2 = sp.reshape(T_pad, 1)

    w1c = params["w1"].astype(compute_dtype)
    w2c = params["w2"].astype(compute_dtype)
    b1_3 = params["b1"].reshape(E, 1, H).astype(jnp.float32)
    b2_3 = params["b2"].reshape(E, 1, d).astype(jnp.float32)
    # TODO(synk): for very large d*H (e.g. v7x 64 MiB VMEM), add a grid axis tiling H of
    # W1 / W2 with an f32 VMEM accumulator instead of full-expert weight blocks.

    grid_spec = pltpu.PrefetchScalarGridSpec(
        num_scalar_prefetch=4,                      # gid, mtile, gstart, gend -> SMEM
        grid=(num_steps,),
        in_specs=[
            pl.BlockSpec((tm, 1), lambda s, g_r, m_r, st_r, en_r: (m_r[s], 0)),        # probs
            pl.BlockSpec((tm, d), lambda s, g_r, m_r, st_r, en_r: (m_r[s], 0)),        # xs tile
            pl.BlockSpec((1, d, H), lambda s, g_r, m_r, st_r, en_r: (g_r[s], 0, 0)),   # W1[e]
            pl.BlockSpec((1, 1, H), lambda s, g_r, m_r, st_r, en_r: (g_r[s], 0, 0)),   # b1[e]
            pl.BlockSpec((1, H, d), lambda s, g_r, m_r, st_r, en_r: (g_r[s], 0, 0)),   # W2[e]
            pl.BlockSpec((1, 1, d), lambda s, g_r, m_r, st_r, en_r: (g_r[s], 0, 0)),   # b2[e]
        ],
        out_specs=pl.BlockSpec((tm, d), lambda s, g_r, m_r, st_r, en_r: (m_r[s], 0)),
    )

    ys = pl.pallas_call(
        functools.partial(grouped_expert_kernel, tm=tm),
        out_shape=jax.ShapeDtypeStruct((T_pad, d), jnp.float32),
        grid_spec=grid_spec,
        compiler_params=pltpu.CompilerParams(dimension_semantics=("arbitrary",)),
    )(gid, mtile, gstart, gend, sp2, xs, w1c, b1_3, w2c, b2_3)

    # Combine: gather per-(token, k) outputs back with the inverse permutation and sum
    # over k (gather + reshape + reduce instead of a scatter-add), then add the residual.
    inv = jnp.argsort(order)                        # position of pair j in the sorted order, < T
    per_pair = ys[inv].reshape(B, top_k, d)
    expert_out = per_pair.sum(axis=1)
    return x.astype(jnp.float32) + expert_out


# ---------------------------------------------------------------------------
# Pure-JAX reference.  compute_dtype=float32 mirrors the PyTorch module exactly;
# compute_dtype=bfloat16 mirrors the kernel's mixed-precision choices.
# ---------------------------------------------------------------------------
def moe_ref(x, params, *, top_k=2, eps=1e-10, compute_dtype=jnp.float32):
    rms = jnp.sqrt(jnp.mean(x ** 2, axis=1, keepdims=True) + eps)
    xn = params["norm_w"] * (x / rms)
    logits = xn @ params["router_w"] + params["router_b"]
    vals, idxs = jax.lax.top_k(logits, top_k)
    probs = jax.nn.softmax(vals, axis=-1)
    xn_c = xn.astype(compute_dtype)
    w1 = params["w1"].astype(compute_dtype)
    w2 = params["w2"].astype(compute_dtype)
    out = jnp.zeros_like(x)
    for i in range(top_k):
        e = idxs[:, i]
        w = probs[:, i:i + 1]
        hh = jnp.einsum("bd,bdh->bh", xn_c, w1[e],
                        preferred_element_type=jnp.float32) + params["b1"][e]
        hh = hh * jax.nn.sigmoid(hh)
        y = jnp.einsum("bh,bhd->bd", hh.astype(compute_dtype), w2[e],
                       preferred_element_type=jnp.float32) + params["b2"][e]
        out = out + y * w
    return out + x


if __name__ == "__main__":
    B, d, E, K = 80, 128, 8, 2
    H = 4 * d

    key = jax.random.PRNGKey(0)
    kx, k1, k2, k3, k4, k5, k6 = jax.random.split(key, 7)

    x = jax.random.normal(kx, (B, d), dtype=jnp.float32)
    params = {
        "norm_w": jnp.ones((d,), dtype=jnp.float32),                       # RMSNorm weight
        "router_w": 0.1 * jax.random.normal(k1, (d, E), dtype=jnp.float32),
        "router_b": 0.1 * jax.random.normal(k2, (E,), dtype=jnp.float32),
        "w1": 0.1 * jax.random.normal(k3, (E, d, H), dtype=jnp.float32),   # Linear(d, 4d)
        "b1": 0.1 * jax.random.normal(k4, (E, H), dtype=jnp.float32),
        "w2": 0.1 * jax.random.normal(k5, (E, H, d), dtype=jnp.float32),   # Linear(4d, d)
        "b2": 0.1 * jax.random.normal(k6, (E, d), dtype=jnp.float32),
    }

    moe_fn = jax.jit(functools.partial(moe_layer, top_k=K, tm=64))
    out = jax.block_until_ready(moe_fn(x, params))

    ref_matched = jax.block_until_ready(moe_ref(x, params, top_k=K, compute_dtype=jnp.bfloat16))
    ref_f32 = jax.block_until_ready(moe_ref(x, params, top_k=K, compute_dtype=jnp.float32))

    assert out.shape == (B, d)
    assert jnp.allclose(out, ref_matched, atol=5e-3, rtol=5e-3), "mismatch vs matched-precision reference"
    assert jnp.allclose(out, ref_f32, atol=1e-1, rtol=1e-1), "mismatch vs f32 reference"

    print("KERNEL_OK")
</pallas_src>

<mosaic_0001>
module attributes {stable_mosaic.version = 11 : i64} {
  func.func private @main(%arg0: i32) attributes {dimension_semantics = [#tpu.dimension_semantics<core_parallel>], iteration_bounds = array<i64: 2>, tpu.core_type = #tpu.core_type<sc_scalar_subcore>, window_params = []} {
    return
  }
}

module attributes {stable_mosaic.version = 11 : i64} {
  func.func private @main(%arg0: i32) attributes {dimension_semantics = [#tpu.dimension_semantics<core_parallel>], iteration_bounds = array<i64: 2>, tpu.core_type = #tpu.core_type<sc_scalar_subcore>, window_params = []} {
    return
  }
}

module attributes {stable_mosaic.version = 11 : i64} {
  func.func @rmsnorm_router_kernel(%arg0: i32, %arg1: memref<16x128xf32, #tpu.memory_space<vmem>>, %arg2: memref<1x128xf32, #tpu.memory_space<vmem>>, %arg3: memref<128x8xf32, #tpu.memory_space<vmem>>, %arg4: memref<1x8xf32, #tpu.memory_space<vmem>>, %arg5: memref<16x128xbf16, #tpu.memory_space<vmem>>, %arg6: memref<16x8xf32, #tpu.memory_space<vmem>>) attributes {dimension_semantics = [#tpu.dimension_semantics<parallel>], iteration_bounds = array<i64: 5>, scalar_prefetch = 0 : i64, scratch_operands = 0 : i64, tpu.core_type = #tpu.core_type<tc>, window_params = [{transform_indices = @transform_0, window_bounds = array<i64: 16, 128>}, {pipeline_mode = #tpu.pipeline_mode<synchronous>, transform_indices = @transform_1, window_bounds = array<i64: 1, 128>}, {pipeline_mode = #tpu.pipeline_mode<synchronous>, transform_indices = @transform_2, window_bounds = array<i64: 128, 8>}, {pipeline_mode = #tpu.pipeline_mode<synchronous>, transform_indices = @transform_3, window_bounds = array<i64: 1, 8>}, {transform_indices = @transform_4, window_bounds = array<i64: 16, 128>}, {transform_indices = @transform_5, window_bounds = array<i64: 16, 8>}]} {
    %c0 = arith.constant 0 : index
    %c0_0 = arith.constant 0 : index
    %0 = vector.load %arg1[%c0, %c0_0] : memref<16x128xf32, #tpu.memory_space<vmem>>, vector<16x128xf32>
    %1 = arith.mulf %0, %0 : vector<16x128xf32>
    %cst = arith.constant dense<0.000000e+00> : vector<16xf32>
    %2 = vector.multi_reduction <add>, %1, %cst [1] : vector<16x128xf32> to vector<16xf32>
    %3 = vector.shape_cast %2 : vector<16xf32> to vector<16x1xf32>
    %cst_1 = arith.constant 1.280000e+02 : f32
    %4 = vector.broadcast %cst_1 : f32 to vector<16x1xf32>
    %5 = arith.divf %3, %4 : vector<16x1xf32>
    %cst_2 = arith.constant 1.000000e-10 : f32
    %6 = vector.broadcast %cst_2 : f32 to vector<16x1xf32>
    %7 = arith.addf %5, %6 : vector<16x1xf32>
    %8 = math.rsqrt %7 : vector<16x1xf32>
    %c0_3 = arith.constant 0 : index
    %c0_4 = arith.constant 0 : index
    %9 = vector.load %arg2[%c0_3, %c0_4] : memref<1x128xf32, #tpu.memory_space<vmem>>, vector<1x128xf32>
    %10 = vector.broadcast %8 : vector<16x1xf32> to vector<16x128xf32>
    %11 = arith.mulf %0, %10 : vector<16x128xf32>
    %12 = vector.broadcast %9 : vector<1x128xf32> to vector<16x128xf32>
    %13 = arith.mulf %12, %11 : vector<16x128xf32>
    %14 = arith.truncf %13 : vector<16x128xf32> to vector<16x128xbf16>
    %c0_5 = arith.constant 0 : index
    %c0_6 = arith.constant 0 : index
    %15 = vector.load %arg5[%c0_5, %c0_6] : memref<16x128xbf16, #tpu.memory_space<vmem>>, vector<16x128xbf16>
    tpu.vector_store %arg5[%c0_5, %c0_6], %14 {strides = array<i32>} : memref<16x128xbf16, #tpu.memory_space<vmem>>, vector<16x128xbf16>,
    %c0_7 = arith.constant 0 : index
    %c0_8 = arith.constant 0 : index
    %16 = vector.load %arg3[%c0_7, %c0_8] : memref<128x8xf32, #tpu.memory_space<vmem>>, vector<128x8xf32>
    %cst_9 = arith.constant dense<0.000000e+00> : vector<16x8xf32>
    %17 = tpu.matmul %13, %16, %cst_9 {dimension_numbers = #tpu.dot_dimension_numbers<[1], [0], [0], [1], [0, 0, 1, 1], [], []>} : vector<16x128xf32>, vector<128x8xf32>, vector<16x8xf32> -> vector<16x8xf32>
    %c0_10 = arith.constant 0 : index
    %c0_11 = arith.constant 0 : index
    %18 = vector.load %arg4[%c0_10, %c0_11] : memref<1x8xf32, #tpu.memory_space<vmem>>, vector<1x8xf32>
    %19 = vector.broadcast %18 : vector<1x8xf32> to vector<16x8xf32>
    %20 = arith.addf %17, %19 : vector<16x8xf32>
    %c0_12 = arith.constant 0 : index
    %c0_13 = arith.constant 0 : index
    %21 = vector.load %arg6[%c0_12, %c0_13] : memref<16x8xf32, #tpu.memory_space<vmem>>, vector<16x8xf32>
    tpu.vector_store %arg6[%c0_12, %c0_13], %20 {strides = array<i32>} : memref<16x8xf32, #tpu.memory_space<vmem>>, vector<16x8xf32>,
    return
  }
  func.func @transform_0(%arg0: i32) -> (i32, i32) {
    %c0_i32 = arith.constant 0 : i32
    %c0_i32_0 = arith.constant 0 : i32
    return %arg0, %c0_i32 : i32, i32
  }
  func.func @transform_1(%arg0: i32) -> (i32, i32) {
    %c0_i32 = arith.constant 0 : i32
    %c0_i32_0 = arith.constant 0 : i32
    %c0_i32_1 = arith.constant 0 : i32
    return %c0_i32, %c0_i32_0 : i32, i32
  }
  func.func @transform_2(%arg0: i32) -> (i32, i32) {
    %c0_i32 = arith.constant 0 : i32
    %c0_i32_0 = arith.constant 0 : i32
    %c0_i32_1 = arith.constant 0 : i32
    return %c0_i32, %c0_i32_0 : i32, i32
  }
  func.func @transform_3(%arg0: i32) -> (i32, i32) {
    %c0_i32 = arith.constant 0 : i32
    %c0_i32_0 = arith.constant 0 : i32
    %c0_i32_1 = arith.constant 0 : i32
    return %c0_i32, %c0_i32_0 : i32, i32
  }
  func.func @transform_4(%arg0: i32) -> (i32, i32) {
    %c0_i32 = arith.constant 0 : i32
    %c0_i32_0 = arith.constant 0 : i32
    return %arg0, %c0_i32 : i32, i32
  }
  func.func @transform_5(%arg0: i32) -> (i32, i32) {
    %c0_i32 = arith.constant 0 : i32
    %c0_i32_0 = arith.constant 0 : i32
    return %arg0, %c0_i32 : i32, i32
  }
}

module attributes {stable_mosaic.version = 11 : i64} {
  func.func @grouped_expert_kernel(%arg0: i32, %arg1: memref<10xi32, #tpu.memory_space<smem>>, %arg2: memref<10xi32, #tpu.memory_space<smem>>, %arg3: memref<8xi32, #tpu.memory_space<smem>>, %arg4: memref<8xi32, #tpu.memory_space<smem>>, %arg5: memref<64x1xf32, #tpu.memory_space<vmem>>, %arg6: memref<64x128xbf16, #tpu.memory_space<vmem>>, %arg7: memref<1x128x512xbf16, #tpu.memory_space<vmem>>, %arg8: memref<1x1x512xf32, #tpu.memory_space<vmem>>, %arg9: memref<1x512x128xbf16, #tpu.memory_space<vmem>>, %arg10: memref<1x1x128xf32, #tpu.memory_space<vmem>>, %arg11: memref<64x128xf32, #tpu.memory_space<vmem>>) attributes {dimension_semantics = [#tpu.dimension_semantics<arbitrary>], iteration_bounds = array<i64: 10>, scalar_prefetch = 4 : i64, scratch_operands = 0 : i64, tpu.core_type = #tpu.core_type<tc>, window_params = [{transform_indices = @transform_0, window_bounds = array<i64: 64, 1>}, {transform_indices = @transform_1, window_bounds = array<i64: 64, 128>}, {transform_indices = @transform_2, window_bounds = array<i64: 1, 128, 512>}, {transform_indices = @transform_3, window_bounds = array<i64: 1, 1, 512>}, {transform_indices = @transform_4, window_bounds = array<i64: 1, 512, 128>}, {transform_indices = @transform_5, window_bounds = array<i64: 1, 1, 128>}, {transform_indices = @transform_6, window_bounds = array<i64: 64, 128>}]} {
    %0 = arith.index_cast %arg0 : i32 to index
    %1 = memref.load %arg1[%0] : memref<10xi32, #tpu.memory_space<smem>>
    %2 = arith.index_cast %arg0 : i32 to index
    %3 = memref.load %arg2[%2] : memref<10xi32, #tpu.memory_space<smem>>
    %c64_i32 = arith.constant 64 : i32
    %4 = arith.muli %3, %c64_i32 : i32
    %5 = arith.index_cast %1 : i32 to index
    %6 = memref.load %arg3[%5] : memref<8xi32, #tpu.memory_space<smem>>
    %7 = arith.index_cast %1 : i32 to index
    %8 = memref.load %arg4[%7] : memref<8xi32, #tpu.memory_space<smem>>
    %c0 = arith.constant 0 : index
    %c0_0 = arith.constant 0 : index
    %9 = vector.load %arg6[%c0, %c0_0] : memref<64x128xbf16, #tpu.memory_space<vmem>>, vector<64x128xbf16>
    %c0_1 = arith.constant 0 : index
    %c0_2 = arith.constant 0 : index
    %c0_3 = arith.constant 0 : index
    %10 = vector.load %arg7[%c0_1, %c0_2, %c0_3] : memref<1x128x512xbf16, #tpu.memory_space<vmem>>, vector<1x128x512xbf16>
    %11 = vector.shape_cast %10 : vector<1x128x512xbf16> to vector<128x512xbf16>
    %cst = arith.constant dense<0.000000e+00> : vector<64x512xf32>
    %12 = tpu.matmul %9, %11, %cst {dimension_numbers = #tpu.dot_dimension_numbers<[1], [0], [0], [1], [0, 0, 1, 1], [], []>} : vector<64x128xbf16>, vector<128x512xbf16>, vector<64x512xf32> -> vector<64x512xf32>
    %c0_4 = arith.constant 0 : index
    %c0_5 = arith.constant 0 : index
    %c0_6 = arith.constant 0 : index
    %13 = vector.load %arg8[%c0_4, %c0_5, %c0_6] : memref<1x1x512xf32, #tpu.memory_space<vmem>>, vector<1x1x512xf32>
    %14 = vector.shape_cast %13 : vector<1x1x512xf32> to vector<1x512xf32>
    %15 = vector.broadcast %14 : vector<1x512xf32> to vector<64x512xf32>
    %16 = arith.addf %12, %15 : vector<64x512xf32>
    %17 = arith.negf %16 : vector<64x512xf32>
    %18 = math.exp %17 : vector<64x512xf32>
    %cst_7 = arith.constant 1.000000e+00 : f32
    %19 = vector.broadcast %cst_7 : f32 to vector<64x512xf32>
    %20 = arith.addf %19, %18 : vector<64x512xf32>
    %21 = arith.divf %19, %20 : vector<64x512xf32>
    %22 = arith.mulf %16, %21 : vector<64x512xf32>
    %23 = arith.truncf %22 : vector<64x512xf32> to vector<64x512xbf16>
    %c0_8 = arith.constant 0 : index
    %c0_9 = arith.constant 0 : index
    %c0_10 = arith.constant 0 : index
    %24 = vector.load %arg9[%c0_8, %c0_9, %c0_10] : memref<1x512x128xbf16, #tpu.memory_space<vmem>>, vector<1x512x128xbf16>
    %25 = vector.shape_cast %24 : vector<1x512x128xbf16> to vector<512x128xbf16>
    %cst_11 = arith.constant dense<0.000000e+00> : vector<64x128xf32>
    %26 = tpu.matmul %23, %25, %cst_11 {dimension_numbers = #tpu.dot_dimension_numbers<[1], [0], [0], [1], [0, 0, 1, 1], [], []>} : vector<64x512xbf16>, vector<512x128xbf16>, vector<64x128xf32> -> vector<64x128xf32>
    %c0_12 = arith.constant 0 : index
    %c0_13 = arith.constant 0 : index
    %c0_14 = arith.constant 0 : index
    %27 = vector.load %arg10[%c0_12, %c0_13, %c0_14] : memref<1x1x128xf32, #tpu.memory_space<vmem>>, vector<1x1x128xf32>
    %28 = vector.shape_cast %27 : vector<1x1x128xf32> to vector<1x128xf32>
    %29 = vector.broadcast %28 : vector<1x128xf32> to vector<64x128xf32>
    %30 = arith.addf %26, %29 : vector<64x128xf32>
    %c0_15 = arith.constant 0 : index
    %c0_16 = arith.constant 0 : index
    %31 = vector.load %arg5[%c0_15, %c0_16] : memref<64x1xf32, #tpu.memory_space<vmem>>, vector<64x1xf32>
    %32 = vector.broadcast %31 : vector<64x1xf32> to vector<64x128xf32>
    %33 = arith.mulf %30, %32 : vector<64x128xf32>
    %34 = arith.cmpi sle, %6, %4 : i32
    %c64_i32_17 = arith.constant 64 : i32
    %35 = arith.addi %4, %c64_i32_17 : i32
    %36 = arith.cmpi sge, %8, %35 : i32
    %37 = arith.andi %34, %36 : i1
    %38 = arith.extui %37 : i1 to i32
    %c0_i32 = arith.constant 0 : i32
    %39 = arith.cmpi ne, %38, %c0_i32 : i32
    scf.if %39 {
      %c0_19 = arith.constant 0 : index
      %c0_20 = arith.constant 0 : index
      %43 = vector.load %arg11[%c0_19, %c0_20] : memref<64x128xf32, #tpu.memory_space<vmem>>, vector<64x128xf32>
      tpu.vector_store %arg11[%c0_19, %c0_20], %33 {strides = array<i32>} : memref<64x128xf32, #tpu.memory_space<vmem>>, vector<64x128xf32>,
    } else {
    }
    %true = arith.constant true
    %40 = arith.xori %37, %true : i1
    %41 = arith.extui %40 : i1 to i32
    %c0_i32_18 = arith.constant 0 : i32
    %42 = arith.cmpi ne, %41, %c0_i32_18 : i32
    scf.if %42 {
      %43 = tpu.iota {dimensions = array<i32: 0>} : vector<64x1xi32>
      %44 = vector.broadcast %4 : i32 to vector<64x1xi32>
      %45 = arith.addi %44, %43 : vector<64x1xi32>
      %46 = vector.broadcast %6 : i32 to vector<64x1xi32>
      %47 = arith.cmpi sge, %45, %46 : vector<64x1xi32>
      %48 = vector.broadcast %8 : i32 to vector<64x1xi32>
      %49 = arith.cmpi slt, %45, %48 : vector<64x1xi32>
      %50 = arith.andi %47, %49 : vector<64x1xi1>
      %c0_19 = arith.constant 0 : index
      %c0_20 = arith.constant 0 : index
      %51 = vector.load %arg11[%c0_19, %c0_20] : memref<64x128xf32, #tpu.memory_space<vmem>>, vector<64x128xf32>
      %52 = vector.shape_cast %50 : vector<64x1xi1> to vector<64x1xi1>
      %53 = vector.broadcast %52 : vector<64x1xi1> to vector<64x128xi1>
      %54 = arith.select %53, %33, %51 : vector<64x128xi1>, vector<64x128xf32>
      %c0_21 = arith.constant 0 : index
      %c0_22 = arith.constant 0 : index
      %55 = vector.load %arg11[%c0_21, %c0_22] : memref<64x128xf32, #tpu.memory_space<vmem>>, vector<64x128xf32>
      tpu.vector_store %arg11[%c0_21, %c0_22], %54 {strides = array<i32>} : memref<64x128xf32, #tpu.memory_space<vmem>>, vector<64x128xf32>,
    } else {
    }
    return
  }
  func.func @transform_0(%arg0: i32, %arg1: memref<10xi32, #tpu.memory_space<smem>>, %arg2: memref<10xi32, #tpu.memory_space<smem>>, %arg3: memref<8xi32, #tpu.memory_space<smem>>, %arg4: memref<8xi32, #tpu.memory_space<smem>>) -> (i32, i32) {
    %0 = arith.index_cast %arg0 : i32 to index
    %1 = memref.load %arg2[%0] : memref<10xi32, #tpu.memory_space<smem>>
    %c0_i32 = arith.constant 0 : i32
    %c0_i32_0 = arith.constant 0 : i32
    return %1, %c0_i32 : i32, i32
  }
  func.func @transform_1(%arg0: i32, %arg1: memref<10xi32, #tpu.memory_space<smem>>, %arg2: memref<10xi32, #tpu.memory_space<smem>>, %arg3: memref<8xi32, #tpu.memory_space<smem>>, %arg4: memref<8xi32, #tpu.memory_space<smem>>) -> (i32, i32) {
    %0 = arith.index_cast %arg0 : i32 to index
    %1 = memref.load %arg2[%0] : memref<10xi32, #tpu.memory_space<smem>>
    %c0_i32 = arith.constant 0 : i32
    %c0_i32_0 = arith.constant 0 : i32
    return %1, %c0_i32 : i32, i32
  }
  func.func @transform_2(%arg0: i32, %arg1: memref<10xi32, #tpu.memory_space<smem>>, %arg2: memref<10xi32, #tpu.memory_space<smem>>, %arg3: memref<8xi32, #tpu.memory_space<smem>>, %arg4: memref<8xi32, #tpu.memory_space<smem>>) -> (i32, i32, i32) {
    %0 = arith.index_cast %arg0 : i32 to index
    %1 = memref.load %arg1[%0] : memref<10xi32, #tpu.memory_space<smem>>
    %c0_i32 = arith.constant 0 : i32
    %c0_i32_0 = arith.constant 0 : i32
    %c0_i32_1 = arith.constant 0 : i32
    return %1, %c0_i32, %c0_i32_0 : i32, i32, i32
  }
  func.func @transform_3(%arg0: i32, %arg1: memref<10xi32, #tpu.memory_space<smem>>, %arg2: memref<10xi32, #tpu.memory_space<smem>>, %arg3: memref<8xi32, #tpu.memory_space<smem>>, %arg4: memref<8xi32, #tpu.memory_space<smem>>) -> (i32, i32, i32) {
    %0 = arith.index_cast %arg0 : i32 to index
    %1 = memref.load %arg1[%0] : memref<10xi32, #tpu.memory_space<smem>>
    %c0_i32 = arith.constant 0 : i32
    %c0_i32_0 = arith.constant 0 : i32
    %c0_i32_1 = arith.constant 0 : i32
    return %1, %c0_i32, %c0_i32_0 : i32, i32, i32
  }
  func.func @transform_4(%arg0: i32, %arg1: memref<10xi32, #tpu.memory_space<smem>>, %arg2: memref<10xi32, #tpu.memory_space<smem>>, %arg3: memref<8xi32, #tpu.memory_space<smem>>, %arg4: memref<8xi32, #tpu.memory_space<smem>>) -> (i32, i32, i32) {
    %0 = arith.index_cast %arg0 : i32 to index
    %1 = memref.load %arg1[%0] : memref<10xi32, #tpu.memory_space<smem>>
    %c0_i32 = arith.constant 0 : i32
    %c0_i32_0 = arith.constant 0 : i32
    %c0_i32_1 = arith.constant 0 : i32
    return %1, %c0_i32, %c0_i32_0 : i32, i32, i32
  }
  func.func @transform_5(%arg0: i32, %arg1: memref<10xi32, #tpu.memory_space<smem>>, %arg2: memref<10xi32, #tpu.memory_space<smem>>, %arg3: memref<8xi32, #tpu.memory_space<smem>>, %arg4: memref<8xi32, #tpu.memory_space<smem>>) -> (i32, i32, i32) {
    %0 = arith.index_cast %arg0 : i32 to index
    %1 = memref.load %arg1[%0] : memref<10xi32, #tpu.memory_space<smem>>
    %c0_i32 = arith.constant 0 : i32
    %c0_i32_0 = arith.constant 0 : i32
    %c0_i32_1 = arith.constant 0 : i32
    return %1, %c0_i32, %c0_i32_0 : i32, i32, i32
  }
  func.func @transform_6(%arg0: i32, %arg1: memref<10xi32, #tpu.memory_space<smem>>, %arg2: memref<10xi32, #tpu.memory_space<smem>>, %arg3: memref<8xi32, #tpu.memory_space<smem>>, %arg4: memref<8xi32, #tpu.memory_space<smem>>) -> (i32, i32) {
    %0 = arith.index_cast %arg0 : i32 to index
    %1 = memref.load %arg2[%0] : memref<10xi32, #tpu.memory_space<smem>>
    %c0_i32 = arith.constant 0 : i32
    %c0_i32_0 = arith.constant 0 : i32
    return %1, %c0_i32 : i32, i32
  }
}

</mosaic_0001>

<bundles_post_ra>
// kernel: moe_layer.2
= control target key start
LH: loop header
LB: loop body
LE: loop exit
PB: predicated region body
PF: predicated region fallthrough
CT: control target
= control target key end

     0   :  { %11 = vsyncpa [#allocation3], 0  ;;  %s1126_s0 = inlined_call_operand.hbm [shape: f32[80,128], index: 0, kind: input, shape index: {}]   ;;  %s1127_s1 = inlined_call_operand.hbm [shape: f32[1,128], index: 1, kind: input, shape index: {}]   ;;  %s1128_s2 = inlined_call_operand.vmem [shape: f32[128,8], index: 2, kind: input, shape index: {}]   ;;  %s1129_s3 = inlined_call_operand.hbm [shape: f32[1,8], index: 3, kind: input, shape index: {}]   ;;  %s1130_s4 = inlined_call_operand.vmem [shape: bf16[80,128], index: 4, kind: output, shape index: {0}]   ;;  %s1131_s5 = inlined_call_operand.vmem [shape: f32[80,8], index: 5, kind: output, shape index: {1}]  }
   0x1   :  { %13 = vsyncpa [#allocation3 + $0x1], 0 }
   0x2   :  { %14 = vsyncpa [#allocation5], 0  ;;  %s886_s18 = smov 0   ;;  %s888_s19 = smov 0  }
   0x3   :  { %s890_s20 = smov 0   ;;  %s892_s21 = smov 0  }
   0x4 LB: > { %s543_s22 = sadd.s32 4294967295, %s849_s21   ;;  %s906_s23 = sadd.s32 1, %s849_s21   ;;  %s849_s21 = sphi %s892_s21, %s1150_s21   ;;  %s845_s20 = sphi %s890_s20, %s1149_s20   ;;  %s841_s19 = sphi %s888_s19, %s1148_s19   ;;  %s837_s18 = sphi %s886_s18, %s1147_s18  }
   0x5   : > { %s24_s24 = ssub.s32 %s849_s21, %s906_s23  ;;  %s27_s25 = sadd.s32 1, %s845_s20 }
   0x6   : > { %p25_p0 = scmp.eq.s32.totalorder %s24_s24, 0  ;;  %p34_p1 = scmp.ne.s32.totalorder %s845_s20, %s841_s19 }
   0x7   : > { %p35_p2 = scmp.eq.s32.totalorder %s849_s21, 0  ;;  %p40_p3 = scmp.ne.s32.totalorder %s841_s19, %s837_s18 }
   0x8   : > { %s916_s26 = scalar_select %p25_p0, %s845_s20, %s27_s25  }
   0x9   : > { %p918_p4 = por %p35_p2, %p34_p1  ;;  %p924_p5 = scmp.eq.s32.totalorder %s543_s22, 0 }
   0xa   : > { %p545_p6 = scmp.ge.s32.totalorder %s849_s21, 1  ;;  %p166_p7 = scmp.lt.s32.totalorder %s849_s21, 6 }
   0xb   : > { %s1138_s28 = scalar_select %p924_p5, 1, 0 }
   0xc   : > { %p932_p8 = por %p924_p5, %p40_p3  ;;  %p936_p9 = pnand %p545_p6, %p166_p7 }
   0xd   : > { %s851_s6 = smov [#allocation4]   ;;  %p682_p11 = scmp.lt.s32.totalorder %s849_s21, 5 }
   0xe   : > { %s1139_s29 = scalar_select %p932_p8, 1, 0 }
   0xf   : > { %s1140_s30 = scalar_select %p936_p9, 1, 0 }
  0x10   : > { %s179_s7 = sshll.u32 %s851_s6, 4  ;;  %p669_p10 = pneg %p936_p9  ;;  %s180_s7 = int_to_ptr.vmem [resolvable:$true] %s179_s7 }
  0x11   : > { %s852_s9 = smov [#allocation6]   ;;  %p951_p13 = pnand %p682_p11, %p918_p4 }
  0x12   : > { %p945_p12 = pnand %p669_p10, %p924_p5  ;;  %s193_s10 = sshll.u32 %s852_s9, 4  ;;  %s955_s10 = int_to_ptr.vmem [resolvable:$true] %s193_s10 }
  0x13   : > { %s1142_s11 = scalar_select %p951_p13, 1, 0 }
  0x14   : > { %s204_s12 = sand.u32 1, %s845_s20   ;;  %s725_s15 = scalar_lea.hbm %s1127_s1, 16 }
  0x15   : > { %p726_p0 = scmp.ne.s32.totalorder %s1127_s1, %s725_s15  ;;  %p727_p1 = pneg %p945_p12 }
  0x16   : > { %p732_p4 = scmp.lt.u32.totalorder %s725_s15, %s1127_s1 }
  0x17   : > { %p728_p2 = pnand %p727_p1, %p726_p0 }
  0x19   : > { %p729_p3 = pneg %p728_p2 }
  0x1b   : > { %p734_p6 = pnand %p732_p4, %p729_p3 }
  0x1d   : > { %737 = shalt.err (!%p734_p6)
}
  0x1e   : > { %s738_s25 = scalar_lea.vmem %s180_s7, 16  ;;  %s745_s27 = scalar_lea.vmem %s180_s7, 32 }
  0x1f   : > { %p739_p7 = scmp.ne.s32.totalorder %s180_s7, %s738_s25  ;;  %p746_p5 = scmp.lt.s32.totalorder %s180_s7, %s180_s7 }
  0x20   : > { %p747_p8 = scmp.lt.s32.totalorder %s745_s27, %s738_s25 }
  0x21   : > { %p741_p10 = pnand %p739_p7, %p727_p1 }
  0x22   : > { %p748_p9 = por %p747_p8, %p746_p5 }
  0x23   : > { %p742_p11 = pneg %p741_p10 }
  0x25   : > { %p749_p13 = pnand %p748_p9, %p742_p11 }
  0x27   : > { %752 = shalt.err (!%p749_p13)
}
  0x28   : > { %672 = dma.hbm_to_vmem [thread:$0]  (!%p945_p12), %s1127_s1, 16, %s180_s7, [#allocation5]  }
  0x29   : > { %s753_s15 = scalar_lea.hbm %s1129_s3, 16 }
  0x2a   : > { %p754_p0 = scmp.ne.s32.totalorder %s1129_s3, %s753_s15  ;;  %p760_p9 = scmp.lt.u32.totalorder %s753_s15, %s1129_s3 }
  0x2c   : > { %p756_p5 = pnand %p754_p0, %p727_p1 }
  0x2e   : > { %p757_p8 = pneg %p756_p5 }
  0x30   : > { %p762_p13 = pnand %p760_p9, %p757_p8 }
  0x32   : > { %765 = shalt.err (!%p762_p13)
}
  0x33   : > { %s766_s7 = scalar_lea.vmem %s955_s10, 16  ;;  %s773_s25 = scalar_lea.vmem %s955_s10, 32 }
  0x34   : > { %p767_p2 = scmp.ne.s32.totalorder %s955_s10, %s766_s7  ;;  %p774_p6 = scmp.lt.s32.totalorder %s955_s10, %s955_s10 }
  0x35   : > { %p775_p7 = scmp.lt.s32.totalorder %s773_s25, %s766_s7 }
  0x36   : > { %p769_p3 = pnand %p767_p2, %p727_p1 }
  0x37   : > { %p776_p10 = por %p775_p7, %p774_p6 }
  0x38   : > { %p770_p4 = pneg %p769_p3 }
  0x3a   : > { %p777_p11 = pnand %p776_p10, %p770_p4 }
  0x3c   : > { %780 = shalt.err (!%p777_p11)
}
  0x3d   : > { %675 = dma.hbm_to_vmem [thread:$0]  (!%p945_p12), %s1129_s3, 16, %s955_s10, [#allocation5]  }
  0x3e   : > { %s549_s9 = sshll.u32 %s204_s12, 4  ;;  %s566_s13 = sshll.u32 %s849_s21, 8 }
  0x3f   : > { %s1012_s16 = scalar_lea.hbm %s1126_s0, %s566_s13  ;;  %s208_s8 = scalar_lea.vmem [#allocation2], %s549_s9 }
  0x40   : > { %s215_s17 = sshll.u32 %s208_s8, 4  ;;  %s1018_s18 = scalar_lea.sflag [#allocation3], %s204_s12  ;;  %s1014_s17 = int_to_ptr.vmem [resolvable:$true] %s215_s17 }
  0x41   : > { %s781_s10 = scalar_lea.hbm %s1012_s16, 256  ;;  %p1143_p1 = scmp.ne.s32.totalorder %s1142_s11, 0 }
  0x42   : > { %p782_p12 = scmp.ne.s32.totalorder %s1012_s16, %s781_s10  ;;  %s786_s25 = scalar_lea.hbm %s1126_s0, 1280 }
  0x43   : > { %p783_p0 = pneg %p1143_p1  ;;  %p787_p9 = scmp.lt.u32.totalorder %s1012_s16, %s1126_s0 }
  0x44   : > { %p788_p13 = scmp.lt.u32.totalorder %s786_s25, %s781_s10  ;;  %p790_p3 = scmp.lt.u32.totalorder %s781_s10, %s1012_s16 }
  0x45   : > { %p784_p5 = pnand %p783_p0, %p782_p12 }
  0x46   : > { %p789_p2 = por %p788_p13, %p787_p9 }
  0x47   : > { %p785_p8 = pneg %p784_p5 }
  0x48   : > { %p791_p4 = por %p790_p3, %p789_p2 }
  0x4a   : > { %p792_p6 = pnand %p791_p4, %p785_p8 }
  0x4c   : > { %795 = shalt.err (!%p792_p6)
}
  0x4d   : > { %s796_s12 = scalar_lea.vmem %s1014_s17, 256  ;;  %s853_s9 = smov [#allocation2]  }
  0x4e   : > { %p797_p7 = scmp.ne.s32.totalorder %s1014_s17, %s796_s12  ;;  %s801_s13 = sshll.u32 %s853_s9, 4  ;;  %s802_s13 = int_to_ptr.vmem [resolvable:$false] %s801_s13 }
  0x4f   : > { %s803_s14 = scalar_lea.vmem %s802_s13, 512  ;;  %p804_p12 = scmp.lt.s32.totalorder %s1014_s17, %s802_s13 }
  0x50   : > { %p799_p10 = pnand %p797_p7, %p783_p0  ;;  %p805_p5 = scmp.lt.s32.totalorder %s803_s14, %s796_s12 }
  0x52   : > { %p800_p11 = pneg %p799_p10  ;;  %p806_p9 = por %p805_p5, %p804_p12 }
  0x54   : > { %p807_p13 = pnand %p806_p9, %p800_p11 }
  0x56   : > { %810 = shalt.err (!%p807_p13)
}
  0x57   : > { %s854_s15 = smov 128   ;;  %s855_s8 = smov 8  }
  0x58   : > { %679 = dma.hbm_to_vmem [thread:$0]  (!%p1143_p1), %s1012_s16, 256, %s1014_s17, %s1018_s18, %s854_s15, %s854_s15, %s855_s8  }
  0x59   : > { %p1144_p0 = scmp.ne.s32.totalorder %s1140_s30, 0 }
  0x5a   : > { %s229_s10 = sand.u32 (!%p1144_p0), 1, %s841_s19   ;;  %p1145_p8 = scmp.ne.s32.totalorder (!%p1144_p0), %s1139_s29, 0 }
  0x5b   : > { %227 = sbr.rel (%p1144_p0) target bundleno = 486 (0x1e6), region = 36  ;;  %s553_s24 = sshll.u32 (!%p1144_p0), %s229_s10, 4 }
  0x5c   : > { %s230_s7 = scalar_lea.sflag (!%p1144_p0), [#allocation3], %s229_s10  ;;  %s233_s25 = scalar_lea.vmem (!%p1144_p0), [#allocation2], %s553_s24 }
  0x62   : > { %828 = dma.done.wait (%p1145_p8), %s230_s7, 256  }
  0x63   : > { %830 = vsyncadd (%p1145_p8), %s230_s7, 4294967040  ;;  %p1146_p2 = scmp.ne.s32.totalorder %s1138_s28, 0 }
  0x65   : > { %832 = dma.done.wait (%p1146_p2), [#allocation5], 32  }
  0x66   : > { %834 = vsyncadd (%p1146_p2), [#allocation5], 4294967264  ;;  %v286_v0 = vld [vmem:[%s233_s25] sm:$0xff]  ;;  %v287_v1 = vld [vmem:[%s233_s25 + $0x8] sm:$0xff]  ;;  %s556_s15 = sshll.u32 %s543_s22, 1  ;;  %vm420_vm0 = vcmask 64512  }
  0x67   : > { %v322_v2 = vld [vmem:[%s1128_s2] sm:$0xff]  ;;  %v288_v3 = vmul.f32 %v286_v0, %v286_v0  ;;  %v323_v4 = vld [vmem:[%s1128_s2 + $0x8] sm:$0xff]  ;;  %v324_v5 = vld [vmem:[%s1128_s2 + $0x10] sm:$0xff]  ;;  %v289_v9 = vmul.f32 %v287_v1, %v287_v1  ;;  %p275_p1 = scmp.lt.s32.totalorder %s556_s15, 9 }
  0x68   : > { %v325_v6 = vld [vmem:[%s1128_s2 + $0x18] sm:$0xff]  ;;  %v627_v7 = vpack.c.bf16 %v323_v4, %v322_v2  ;;  %v326_v10 = vld [vmem:[%s1128_s2 + $0x20] sm:$0xff]  ;;  %v327_v11 = vld [vmem:[%s1128_s2 + $0x28] sm:$0xff] }
  0x69   : > { %v631_v8 = vpack.c.bf16 %v325_v6, %v324_v5  ;;  %290 = vadd.xlane.f32.xlu0 %v288_v3  ;;  %v635_v12 = vpack.c.bf16 %v327_v11, %v326_v10  ;;  %v328_v13 = vld [vmem:[%s1128_s2 + $0x30] sm:$0xff]  ;;  %v329_v14 = vld [vmem:[%s1128_s2 + $0x38] sm:$0xff]  ;;  %v330_v16 = vld [vmem:[%s1128_s2 + $0x40] sm:$0xff]  ;;  %s1152_s15 = smov (!%p275_p1, %s556_s15), 9 }
  0x6a   : > { %628 = vmatprep.subr.bf16.mxu0 %v627_v7  ;;  %v639_v15 = vpack.c.bf16 %v329_v14, %v328_v13  ;;  %v331_v17 = vld [vmem:[%s1128_s2 + $0x48] sm:$0xff]  ;;  %v332_v19 = vld [vmem:[%s1128_s2 + $0x50] sm:$0xff]  ;;  %v333_v20 = vld [vmem:[%s1128_s2 + $0x58] sm:$0xff]  ;;  %s557_s8 = sshll.u32 %s1152_s15, 2  ;;  %s559_s21 = sshll.u32 %s1152_s15, 3 }
  0x6b   : > { %630 = vmatpush3.bf16.msra.mxu0 %v627_v7  ;;  %v643_v18 = vpack.c.bf16 %v331_v17, %v330_v16  ;;  %v334_v21 = vld [vmem:[%s1128_s2 + $0x60] sm:$0xff]  ;;  %v647_v22 = vpack.c.bf16 %v333_v20, %v332_v19  ;;  %v335_v23 = vld [vmem:[%s1128_s2 + $0x68] sm:$0xff]  ;;  %v336_v25 = vld [vmem:[%s1128_s2 + $0x70] sm:$0xff]  ;;  %s278_s7 = scalar_lea.vmem %s1130_s4, %s557_s8  ;;  %s284_s30 = scalar_lea.vmem %s1131_s5, %s559_s21 }
  0x6c   : > { %632 = vmatprep.subr.bf16.mxu0 %v631_v8  ;;  %v651_v24 = vpack.c.bf16 %v335_v23, %v334_v21  ;;  %v337_v26 = vld [vmem:[%s1128_s2 + $0x78] sm:$0xff]  ;;  %v560_v35 = vld [vmem:[#allocation4] ss:$0 sm:$0xff]  ;;  %v563_v42 = vld [vmem:[#allocation6] ss:$0 sm:$0xff] }
  0x6d   : > { %292 = vadd.xlane.f32.xlu0 %v289_v9  ;;  %v655_v27 = vpack.c.bf16 %v337_v26, %v336_v25 }
  0x6f   : > { %634 = vmatpush3.bf16.msra.mxu0 %v631_v8 }
  0x70   : > { %636 = vmatprep.subr.bf16.mxu0 %v635_v12 }
  0x73   : > { %638 = vmatpush3.bf16.msra.mxu0 %v635_v12 }
  0x74   : > { %640 = vmatprep.subr.bf16.mxu0 %v639_v15 }
  0x77   : > { %642 = vmatpush3.bf16.msra.mxu0 %v639_v15 }
  0x78   : > { %644 = vmatprep.subr.bf16.mxu0 %v643_v18 }
  0x7b   : > { %646 = vmatpush3.bf16.msra.mxu0 %v643_v18 }
  0x7c   : > { %648 = vmatprep.subr.bf16.mxu0 %v647_v22 }
  0x7f   : > { %650 = vmatpush3.bf16.msra.mxu0 %v647_v22 }
  0x80   : > { %652 = vmatprep.subr.bf16.mxu0 %v651_v24 }
  0x83   : > { %654 = vmatpush3.bf16.msra.mxu0 %v651_v24 }
  0x84   : > { %656 = vmatprep.subr.bf16.mxu0 %v655_v27 }
  0x87   : > { %658 = vmatpush3.bf16.msra.mxu0 %v655_v27 }
  0xf6   : > { %v291_v28 = vpop.xlane.xlu0 %290 }
  0xf7   : > { %v295_v29 = vmul.f32 0.0078125, %v291_v28 }
  0xf9   : > { %v297_v30 = vadd.f32 1e-10, %v295_v29 }
  0xfa   : > { %v293_v31 = vpop.xlane.xlu0 %292 }
  0xfb   : > { %721 = vrsqrt.f32 %v297_v30  ;;  %v296_v32 = vmul.f32 0.0078125, %v293_v31 }
  0xfd   : > { %v298_v33 = vadd.f32 1e-10, %v296_v32 }
  0xff   : > { %723 = vrsqrt.f32 %v298_v33 }
 0x105   : > { %v722_v34 = vpop.eup %721 }
 0x106   : > { %v302_v36 = vmul.f32 %v722_v34, %v286_v0 }
 0x108   : > { %v310_v37 = vmul.f32 %v560_v35, %v302_v36 }
 0x109   : > { %v724_v38 = vpop.eup %723 }
 0x10a   : > { %v303_v39 = vmul.f32 %v724_v38, %v287_v1  ;;  %624 = vmatprep.mubr.f32.mxu0 %v310_v37 }
 0x10c   : > { %v311_v40 = vmul.f32 %v560_v35, %v303_v39 }
 0x10e   : > { %v572_v41 = vpack.c.bf16 %v311_v40, %v310_v37  ;;  %625 = vmatmul.mubr.f32.vlgmr.msra.gmra.mrb[0].mxu0 %v311_v40 }
 0x110   : > { %573 = vst [vmem:[%s278_s7] sm:$0xff] %v572_v41  }
 0x1e1   : > { %v626_v43 = vpop.f32.mrb[0].mxu0 }
 0x1e2   : > { %v417_v44 = vadd.f32 %v626_v43, %v563_v42  ;;  %v411_v45 = vpop.f32.mrb[1].mxu0 }
 0x1e3   : > { %v412_v46 = vadd.f32 %v563_v42, %v411_v45 }
 0x1e4   : > { %422 = vst.msk [vmem:[%s284_s30 + $0x8] sm:$0xff] %vm420_vm0, %v417_v44 }
 0x1e5   : > { %421 = vst.msk [vmem:[%s284_s30] sm:$0xff] %vm420_vm0, %v412_v46 }
 0x1e6 PF: > { %p17_p3 = scmp.ge.s32.totalorder %s906_s23, 7   ;;  %s1147_s18 = smov %s841_s19 }
 0x1e7   : > { %s1148_s19 = smov %s845_s20  ;;  %s1149_s20 = smov %s916_s26 }
 0x1e8   : > { %s1150_s21 = smov %s906_s23  ;;  %19 = sbr.rel (!%p17_p3) target bundleno = 4 (0x4), region = 96 }
 0x1ef   :  { %462 = vsyncpa [#allocation3], 1 }
 0x1f0   :  { %464 = vsyncpa [#allocation3 + $0x1], 1 }
 0x1f1   :  { %465 = vsyncpa [#allocation5], 1 }

// kernel: moe_layer.3
= control target key start
LH: loop header
LB: loop body
LE: loop exit
PB: predicated region body
PF: predicated region fallthrough
CT: control target
= control target key end

     0   :  { %s2718_s0 = inlined_call_operand.vmem [shape: s32[10], index: 0, kind: input, shape index: {}]   ;;  %s2719_s4 = inlined_call_operand.vmem [shape: f32[192,1], index: 4, kind: input, shape index: {}]   ;;  %s2720_s5 = inlined_call_operand.vmem [shape: bf16[192,128], index: 5, kind: input, shape index: {}]   ;;  %s2721_s6 = inlined_call_operand.vmem [shape: bf16[8,128,512], index: 6, kind: input, shape index: {}]   ;;  %s2722_s7 = inlined_call_operand.vmem [shape: f32[8,1,512], index: 7, kind: input, shape index: {}]   ;;  %s2723_s8 = inlined_call_operand.vmem [shape: bf16[8,512,128], index: 8, kind: input, shape index: {}]   ;;  %s2724_s9 = inlined_call_operand.vmem [shape: f32[8,1,128], index: 9, kind: input, shape index: {}]   ;;  %s2725_s10 = inlined_call_operand.vmem [shape: f32[192,128], index: 10, kind: output, shape index: {}]   ;;  %s2726_s1 = inlined_call_operand.vmem [shape: s32[10], index: 1, kind: input, shape index: {}]   ;;  %s2727_s2 = inlined_call_operand.vmem [shape: s32[8], index: 2, kind: input, shape index: {}]   ;;  %s2728_s3 = inlined_call_operand.vmem [shape: s32[8], index: 3, kind: input, shape index: {}]  }
   0x1   :  { %s15_s15 = sshll.u32 %s2718_s0, 4  ;;  %s19_s18 = sshll.u32 %s2726_s1, 4  ;;  %s16_s15 = int_to_ptr.vmem [resolvable:$true] %s15_s15  ;;  %s20_s18 = int_to_ptr.vmem [resolvable:$true] %s19_s18 }
   0x2   :  { %s2151_s19 = scalar_lea.vmem %s16_s15, 16  ;;  %p2156_p1 = scmp.lt.s32.totalorder %s16_s15, %s16_s15 }
   0x3   :  { %p2152_p0 = scmp.ne.s32.totalorder %s16_s15, %s2151_s19  ;;  %p2157_p2 = scmp.lt.s32.totalorder %s2151_s19, %s2151_s19 }
   0x5   :  { %p2158_p3 = por %p2157_p2, %p2156_p1 }
   0x7   :  { %p2159_p4 = pnand %p2158_p3, %p2152_p0 }
   0x9   :  { %2162 = shalt.err (!%p2159_p4)  }
   0xa   :  { %s2209_s20 = smov [#allocation3]   ;;  %s2163_s21 = scalar_lea.vmem %s20_s18, 16 }
   0xb   :  { %18 = dma.vmem_to_smem %s16_s15, 16, %s2209_s20, [#allocation2] }
   0xc   :  { %p2164_p5 = scmp.ne.s32.totalorder %s20_s18, %s2163_s21  ;;  %p2168_p6 = scmp.lt.s32.totalorder %s20_s18, %s20_s18 }
   0xd   :  { %p2169_p7 = scmp.lt.s32.totalorder %s2163_s21, %s2163_s21 }
   0xf   :  { %p2170_p8 = por %p2169_p7, %p2168_p6 }
  0x11   :  { %p2171_p9 = pnand %p2170_p8, %p2164_p5 }
  0x13   :  { %2174 = shalt.err (!%p2171_p9)  }
  0x14   :  { %s2210_s0 = smov [#allocation4]   ;;  %s23_s23 = sshll.u32 %s2727_s2, 4  ;;  %s24_s23 = int_to_ptr.vmem [resolvable:$true] %s23_s23 }
  0x15   :  { %22 = dma.vmem_to_smem %s20_s18, 16, %s2210_s0, [#allocation2] }
  0x16   :  { %s27_s26 = sshll.u32 %s2728_s3, 4  ;;  %s2175_s27 = scalar_lea.vmem %s24_s23, 16  ;;  %s28_s26 = int_to_ptr.vmem [resolvable:$true] %s27_s26 }
  0x17   :  { %p2176_p10 = scmp.ne.s32.totalorder %s24_s23, %s2175_s27  ;;  %p2180_p11 = scmp.lt.s32.totalorder %s24_s23, %s24_s23 }
  0x18   :  { %p2181_p12 = scmp.lt.s32.totalorder %s2175_s27, %s2175_s27 }
  0x1a   :  { %p2182_p13 = por %p2181_p12, %p2180_p11 }
  0x1c   :  { %p2183_p0 = pnand %p2182_p13, %p2176_p10 }
  0x1e   :  { %2186 = shalt.err (!%p2183_p0)  }
  0x1f   :  { %s2211_s28 = smov [#allocation5]   ;;  %s2187_s29 = scalar_lea.vmem %s28_s26, 16 }
  0x20   :  { %26 = dma.vmem_to_smem %s24_s23, 16, %s2211_s28, [#allocation2] }
  0x21   :  { %p2188_p1 = scmp.ne.s32.totalorder %s28_s26, %s2187_s29  ;;  %p2192_p2 = scmp.lt.s32.totalorder %s28_s26, %s28_s26 }
  0x22   :  { %p2193_p3 = scmp.lt.s32.totalorder %s2187_s29, %s2187_s29 }
  0x24   :  { %p2194_p4 = por %p2193_p3, %p2192_p2 }
  0x26   :  { %p2195_p5 = pnand %p2194_p4, %p2188_p1 }
  0x28   :  { %2198 = shalt.err (!%p2195_p5)  }
  0x29   :  { %s2212_s2 = smov [#allocation6]  }
  0x2a   :  { %30 = dma.vmem_to_smem %s28_s26, 16, %s2212_s2, [#allocation2] }
  0x2b   :  { %2203 = dma.done.wait [#allocation2], 64 }
  0x2c   :  { %2204 = vsyncadd [#allocation2], 4294967232 }
  0x2d   :  { %32 = sfence }
  0x2e   :  { %s2281_s3 = smov 0  }
  0x2f LB: > { %s2287_s30 = sadd.s32 4294967295, %s2207_s3   ;;  %p1726_p6 = scmp.ge.s32.totalorder %s2207_s3, 1  ;;  %s2207_s3 = sphi %s2281_s3, %s38_s3  }
  0x30   : > { %p309_p7 = scmp.lt.s32.totalorder %s2207_s3, 11 }
  0x32   : > { %p310_p8 = pnand %p1726_p6, %p309_p7 }
  0x33   : > { %s384_s11 = sld [smem:[#allocation3 + %s2287_s30]] (!%p310_p8)  ;;  %v2213_v0 = vmov (!%p310_p8), 0  }
  0x34   : > { %313 = sbr.rel (%p310_p8) target bundleno = 634 (0x27a), region = 44  ;;  %s409_s12 = sld [smem:[#allocation4 + %s2287_s30]] (!%p310_p8)  ;;  %701 = vmatprep.mubr.bf16.mxu0 (!%p310_p8), %v2213_v0  ;;  %774 = vmatprep.mubr.bf16.mxu1 (!%p310_p8), %v2213_v0 }
  0x35   : > { %1937 = vset.pattern.permute.xlu0 (!%p310_p8), %v2213_v0  ;;  %1938 = vset.pattern.permute.xlu1 (!%p310_p8), %v2213_v0  ;;  %s2298_s15 = sld [smem:[#allocation4 + %s2287_s30]] (!%p310_p8) }
  0x36   : > { %s397_s26 = sld [smem:[#allocation3 + %s2287_s30]] (!%p310_p8) }
  0x37   : > { %s404_s28 = sld [smem:[#allocation3 + %s2287_s30]] (!%p310_p8) }
  0x39   : > { %p385_p9 = scmp.lt.s32.totalorder (!%p310_p8), %s384_s11, 7 }
  0x3a   : > { %s1736_s13 = sshll.u32 (!%p310_p8), %s409_s12, 3 }
  0x3b   : > { %p411_p10 = scmp.lt.s32.totalorder %s1736_s13, 23  ;;  %s2731_s11 = smov (!%p385_p9, %s384_s11), 7 }
  0x3c   : > { %s1842_s14 = sshll.u32 %s2731_s11, 8  ;;  %s1729_s1 = sshll.u32 %s2298_s15, 3 }
  0x3d   : > { %s2733_s13 = smov (!%p411_p10, %s1736_s13), 23  ;;  %s2303_s18 = scalar_lea.vmem %s2721_s6, %s1842_s14 }
  0x3e   : > { %s1737_s19 = sshll.u32 %s2733_s13, 3  ;;  %v1939_v1 = vld [vmem:[%s2303_s18 + $0x4] ss:$16 sps:$4 sm:$0xff]   ;;  %v1941_v2 = vld [vmem:[%s2303_s18 + $0xc] ss:$16 sps:$4 sm:$0xff]   ;;  %p378_p11 = scmp.lt.s32.totalorder %s1729_s1, 23 }
  0x3f   : > { %s2308_s0 = scalar_lea.vmem %s2725_s10, %s1737_s19  ;;  %669 = vmatprep.subr.bf16.mxu0 %v1939_v1  ;;  %v1943_v3 = vld [vmem:[%s2303_s18] ss:$16 sps:$4 sm:$0xff]   ;;  %v1944_v4 = vld [vmem:[%s2303_s18 + $0x8] ss:$16 sps:$4 sm:$0xff]   ;;  %742 = vmatprep.subr.bf16.mxu1 %v1941_v2  ;;  %v1945_v5 = vld [vmem:[%s2303_s18 + $0x24] ss:$16 sps:$4 sm:$0xff]  }
  0x40   : > { %670 = vmatpush1.bf16.msra.mxu0 %v1943_v3  ;;  %743 = vmatpush1.bf16.msra.mxu1 %v1944_v4  ;;  %v1947_v6 = vld [vmem:[%s2303_s18 + $0x2c] ss:$16 sps:$4 sm:$0xff]   ;;  %v1949_v7 = vld [vmem:[%s2303_s18 + $0x20] ss:$16 sps:$4 sm:$0xff]   ;;  %v1950_v8 = vld [vmem:[%s2303_s18 + $0x28] ss:$16 sps:$4 sm:$0xff]  }
  0x41   : > { %671 = vmatprep.subr.bf16.mxu0 %v1945_v5  ;;  %744 = vmatprep.subr.bf16.mxu1 %v1947_v6  ;;  %v1951_v9 = vld [vmem:[%s2303_s18 + $0x44] ss:$16 sps:$4 sm:$0xff]   ;;  %v1953_v10 = vld [vmem:[%s2303_s18 + $0x4c] ss:$16 sps:$4 sm:$0xff]   ;;  %v1955_v11 = vld [vmem:[%s2303_s18 + $0x40] ss:$16 sps:$4 sm:$0xff]  }
  0x42   : > { %v1956_v12 = vld [vmem:[%s2303_s18 + $0x48] ss:$16 sps:$4 sm:$0xff]   ;;  %v1957_v13 = vld [vmem:[%s2303_s18 + $0x64] ss:$16 sps:$4 sm:$0xff]   ;;  %v1959_v14 = vld [vmem:[%s2303_s18 + $0x6c] ss:$16 sps:$4 sm:$0xff]  }
  0x43   : > { %v1961_v15 = vld [vmem:[%s2303_s18 + $0x60] ss:$16 sps:$4 sm:$0xff]   ;;  %v1962_v16 = vld [vmem:[%s2303_s18 + $0x68] ss:$16 sps:$4 sm:$0xff]   ;;  %v1963_v17 = vld [vmem:[%s2303_s18 + $0x84] ss:$16 sps:$4 sm:$0xff]  }
  0x44   : > { %672 = vmatpush1.bf16.msra.mxu0 %v1949_v7  ;;  %745 = vmatpush1.bf16.msra.mxu1 %v1950_v8  ;;  %v1965_v18 = vld [vmem:[%s2303_s18 + $0x8c] ss:$16 sps:$4 sm:$0xff]   ;;  %s2735_s1 = smov (!%p378_p11, %s1729_s1), 23  ;;  %v1967_v19 = vld [vmem:[%s2303_s18 + $0x80] ss:$16 sps:$4 sm:$0xff]   ;;  %p398_p12 = scmp.lt.s32.totalorder %s397_s26, 7 }
  0x45   : > { %673 = vmatprep.subr.bf16.mxu0 %v1951_v9  ;;  %746 = vmatprep.subr.bf16.mxu1 %v1953_v10  ;;  %v1968_v20 = vld [vmem:[%s2303_s18 + $0x88] ss:$16 sps:$4 sm:$0xff]   ;;  %v1969_v21 = vld [vmem:[%s2303_s18 + $0xa4] ss:$16 sps:$4 sm:$0xff]   ;;  %v1971_v22 = vld [vmem:[%s2303_s18 + $0xac] ss:$16 sps:$4 sm:$0xff]  }
  0x46   : > { %s1730_s22 = sshll.u32 %s2735_s1, 2  ;;  %v1973_v23 = vld [vmem:[%s2303_s18 + $0xa0] ss:$16 sps:$4 sm:$0xff]   ;;  %v1974_v24 = vld [vmem:[%s2303_s18 + $0xa8] ss:$16 sps:$4 sm:$0xff]   ;;  %s2737_s26 = smov (!%p398_p12, %s397_s26), 7 }
  0x47   : > { %v1975_v25 = vld [vmem:[%s2303_s18 + $0xc4] ss:$16 sps:$4 sm:$0xff]   ;;  %s2339_s25 = scalar_lea.vmem %s2720_s5, %s1730_s22  ;;  %v1977_v26 = vld [vmem:[%s2303_s18 + $0xcc] ss:$16 sps:$4 sm:$0xff]   ;;  %v1979_v27 = vld [vmem:[%s2303_s18 + $0xc0] ss:$16 sps:$4 sm:$0xff]  }
  0x48   : > { %674 = vmatpush1.bf16.msra.mxu0 %v1955_v11  ;;  %747 = vmatpush1.bf16.msra.mxu1 %v1956_v12  ;;  %v1980_v28 = vld [vmem:[%s2303_s18 + $0xc8] ss:$16 sps:$4 sm:$0xff]   ;;  %v1981_v29 = vld [vmem:[%s2303_s18 + $0xe4] ss:$16 sps:$4 sm:$0xff]   ;;  %v1983_v30 = vld [vmem:[%s2303_s18 + $0xec] ss:$16 sps:$4 sm:$0xff]   ;;  %v465_v11 = vlaneseq }
  0x49   : > { %675 = vmatprep.subr.bf16.mxu0 %v1957_v13  ;;  %748 = vmatprep.subr.bf16.mxu1 %v1959_v14  ;;  %v1985_v31 = vld [vmem:[%s2303_s18 + $0xe0] ss:$16 sps:$4 sm:$0xff]   ;;  %v1986_v32 = vld [vmem:[%s2303_s18 + $0xe8] ss:$16 sps:$4 sm:$0xff]   ;;  %s1843_s27 = sshll.u32 %s2737_s26, 8  ;;  %s368_s11 = sld [smem:[#allocation4 + %s2287_s30]] }
  0x4a   : > { %v1987_v33 = vld [vmem:[%s2339_s25] sm:$0xff]   ;;  %v1988_v34 = vld [vmem:[%s2339_s25 + $0x8] sm:$0xff]   ;;  %v1989_v35 = vld [vmem:[%s2339_s25 + $0x10] sm:$0xff]   ;;  %s2362_s2 = scalar_lea.vmem %s2723_s8, %s1843_s27  ;;  %s391_s13 = sld [smem:[#allocation3 + %s2287_s30]]  ;;  %v2401_v14 = vshrl.u32 %v465_v11, 7 }
  0x4b   : > { %v1990_v36 = vld [vmem:[%s2339_s25 + $0x18] sm:$0xff]   ;;  %v1991_v37 = vld [vmem:[%s2362_s2 + $0x40] sm:$0xff]   ;;  %v1995_v41 = vld [vmem:[%s2362_s2 + $0x48] sm:$0xff]   ;;  %s418_s1 = sld [smem:[#allocation3 + %s2287_s30]]  ;;  %p405_p4 = scmp.lt.s32.totalorder %s404_s28, 7 }
  0x4c   : > { %676 = vmatpush1.bf16.msra.mxu0 %v1961_v15  ;;  %749 = vmatpush1.bf16.msra.mxu1 %v1962_v16  ;;  %v1992_v38 = vld [vmem:[%s2362_s2] sm:$0xff]   ;;  %v1996_v42 = vld [vmem:[%s2362_s2 + $0x8] sm:$0xff]   ;;  %v1999_v45 = vld [vmem:[%s2362_s2 + $0x50] sm:$0xff]   ;;  %v467_v15 = vsub.s32 0, %v2401_v14  ;;  %v475_v16 = vsub.s32 2, %v2401_v14  ;;  %s419_s22 = sld [smem:[#allocation4 + %s2287_s30]] }
  0x4d   : > { %677 = vmatprep.subr.bf16.mxu0 %v1963_v17  ;;  %750 = vmatprep.subr.bf16.mxu1 %v1965_v18  ;;  %v1993_v39 = vld [vmem:[%s2362_s2 + $0xc0] sm:$0xff]   ;;  %v1997_v43 = vld [vmem:[%s2362_s2 + $0xc8] sm:$0xff]   ;;  %v2001_v46 = vld [vmem:[%s2362_s2 + $0xd0] sm:$0xff]   ;;  %v471_v18 = vsub.s32 1, %v2401_v14  ;;  %s2743_s28 = smov (!%p405_p4, %s404_s28), 7 }
  0x4e   : > { %v1994_v40 = vld [vmem:[%s2362_s2 + $0x80] sm:$0xff]   ;;  %v1998_v44 = vld [vmem:[%s2362_s2 + $0x88] sm:$0xff]   ;;  %v2000_v47 = vld [vmem:[%s2362_s2 + $0x10] sm:$0xff]  }
  0x4f   : > { %v2002_v48 = vld [vmem:[%s2362_s2 + $0x90] sm:$0xff]   ;;  %v2003_v49 = vld [vmem:[%s2362_s2 + $0x58] sm:$0xff]   ;;  %v2007_v53 = vld [vmem:[%s2362_s2 + $0x60] sm:$0xff]   ;;  %s1727_s12 = sshll.u32 %s368_s11, 3  ;;  %s407_s11 = scalar_lea.vmem %s2724_s9, %s2743_s28 }
  0x50   : > { %678 = vmatpush1.bf16.msra.mxu0 %v1967_v19  ;;  %751 = vmatpush1.bf16.msra.mxu1 %v1968_v20  ;;  %v2005_v50 = vld [vmem:[%s2362_s2 + $0xd8] sm:$0xff]   ;;  %v2009_v54 = vld [vmem:[%s2362_s2 + $0xe0] sm:$0xff]   ;;  %v2011_v57 = vld [vmem:[%s2362_s2 + $0x68] sm:$0xff]   ;;  %p370_p13 = scmp.lt.s32.totalorder %s1727_s12, 23  ;;  %p392_p0 = scmp.lt.s32.totalorder %s391_s13, 7  ;;  %v479_v19 = vsub.s32 3, %v2401_v14 }
  0x51   : > { %679 = vmatprep.subr.bf16.mxu0 %v1969_v21  ;;  %752 = vmatprep.subr.bf16.mxu1 %v1971_v22  ;;  %v2004_v51 = vld [vmem:[%s2362_s2 + $0x18] sm:$0xff]   ;;  %v2008_v55 = vld [vmem:[%s2362_s2 + $0x20] sm:$0xff]   ;;  %v2013_v58 = vld [vmem:[%s2362_s2 + $0xe8] sm:$0xff]   ;;  %s2616_s23 = sld [smem:[#allocation5 + %s418_s1]] }
  0x52   : > { %v2006_v52 = vld [vmem:[%s2362_s2 + $0x98] sm:$0xff]   ;;  %v2010_v56 = vld [vmem:[%s2362_s2 + $0xa0] sm:$0xff]   ;;  %v2012_v59 = vld [vmem:[%s2362_s2 + $0x28] sm:$0xff]   ;;  %s2739_s12 = smov (!%p370_p13, %s1727_s12), 23  ;;  %s2741_s13 = smov (!%p392_p0, %s391_s13), 7 }
  0x53   : > { %v2014_v60 = vld [vmem:[%s2362_s2 + $0xa8] sm:$0xff]   ;;  %v2015_v61 = vld [vmem:[%s2362_s2 + $0x70] sm:$0xff]   ;;  %v2019_v1 = vld [vmem:[%s2362_s2 + $0x78] sm:$0xff]   ;;  %s1728_s14 = sshll.u32 %s2739_s12, 3  ;;  %s1733_s18 = sshll.u32 %s2741_s13, 2 }
  0x54   : > { %680 = vmatpush1.bf16.msra.mxu0 %v1973_v23  ;;  %753 = vmatpush1.bf16.msra.mxu1 %v1974_v24  ;;  %v2017_v62 = vld [vmem:[%s2362_s2 + $0xf0] sm:$0xff]   ;;  %v2021_v2 = vld [vmem:[%s2362_s2 + $0xf8] sm:$0xff]   ;;  %s373_s17 = scalar_lea.vmem %s2719_s4, %s1728_s14  ;;  %s395_s21 = scalar_lea.vmem %s2722_s7, %s1733_s18 }
  0x55   : > { %681 = vmatprep.subr.bf16.mxu0 %v1975_v25  ;;  %754 = vmatprep.subr.bf16.mxu1 %v1977_v26  ;;  %v2016_v63 = vld [vmem:[%s2362_s2 + $0x30] sm:$0xff]   ;;  %v2020_v3 = vld [vmem:[%s2362_s2 + $0x38] sm:$0xff]   ;;  %v1448_v5 = vld [vmem:[%s373_s17] sm:$0xff]  ;;  %s2618_s24 = sld [smem:[#allocation6 + %s418_s1]]  ;;  %s2620_s25 = sshll.u32 %s419_s22, 6 }
  0x56   : > { %v2022_v4 = vld [vmem:[%s2362_s2 + $0xb8] sm:$0xff]   ;;  %v1450_v6 = vld [vmem:[%s373_s17 + $0x10] sm:$0xff]  ;;  %1458 = vperm.xlu0 %1937, %v1448_v5   ;;  %v1449_v7 = vld [vmem:[%s373_s17 + $0x8] sm:$0xff]  ;;  %s1505_s26 = sadd.s32 64, %s2620_s25 }
  0x57   : > { %1468 = vperm.xlu1 %1938, %v1450_v6   ;;  %v1451_v8 = vld [vmem:[%s373_s17 + $0x18] sm:$0xff]  ;;  %v1453_v9 = vld [vmem:[%s373_s17 + $0x28] sm:$0xff]  ;;  %v1452_v10 = vld [vmem:[%s373_s17 + $0x20] sm:$0xff]  ;;  %p1504_p1 = scmp.le.s32.totalorder %s2616_s23, %s2620_s25 }
  0x58   : > { %682 = vmatpush1.bf16.msra.mxu0 %v1979_v27  ;;  %755 = vmatpush1.bf16.msra.mxu1 %v1980_v28  ;;  %v1455_v12 = vld [vmem:[%s373_s17 + $0x38] sm:$0xff]  ;;  %v1454_v13 = vld [vmem:[%s373_s17 + $0x30] sm:$0xff]  ;;  %v463_v17 = vld [vmem:[%s395_s21] sm:$0xf] }
  0x59   : > { %683 = vmatprep.subr.bf16.mxu0 %v1981_v29  ;;  %756 = vmatprep.subr.bf16.mxu1 %v1983_v30  ;;  %v2410_v20 = vrot.slane %v463_v17, %v467_v15  ;;  %v2412_v21 = vrot.slane %v463_v17, %v475_v16  ;;  %v2414_v22 = vrot.slane %v463_v17, %v471_v18 }
  0x5a   : > { %1463 = vperm.xlu0 %1937, %v1449_v7   ;;  %v2416_v23 = vrot.slane %v463_v17, %v479_v19 }
  0x5b   : > { %1473 = vperm.xlu1 %1938, %v1451_v8   ;;  %p1506_p2 = scmp.ge.s32.totalorder %s2618_s24, %s1505_s26 }
  0x5c   : > { %684 = vmatpush1.bf16.msra.mxu0 %v1985_v31  ;;  %757 = vmatpush1.bf16.msra.mxu1 %v1986_v32 }
  0x5d   : > { %1844 = vmatprep.subr.bf16.mxu0 %v1991_v37  ;;  %1884 = vmatprep.subr.bf16.mxu1 %v1993_v39  ;;  %p2626_p3 = pnand %p1506_p2, %p1504_p1 }
  0x5e   : > { %1478 = vperm.xlu0 %1937, %v1452_v10  }
  0x5f   : > { %702 = vmatmul.mubr.bf16.vlgmr.msra.gmra.mrb[0].mxu0 %v1987_v33  ;;  %775 = vmatmul.mubr.bf16.vlgmr.msra.gmra.mrb[0].mxu1 %v1987_v33 }
  0x60   : > { %711 = vmatprep.mubr.bf16.mxu0 %v2213_v0  ;;  %784 = vmatprep.mubr.bf16.mxu1 %v2213_v0 }
  0x61   : > { %1845 = vmatpush3.bf16.msra.mxu0 %v1992_v38  ;;  %1885 = vmatpush3.bf16.msra.mxu1 %v1994_v40 }
  0x62   : > { %1846 = vmatprep.subr.bf16.mxu0 %v1995_v41  ;;  %1886 = vmatprep.subr.bf16.mxu1 %v1997_v43 }
  0x63   : > { %1483 = vperm.xlu1 %1938, %v1453_v9   ;;  %1488 = vperm.xlu0 %1937, %v1454_v13  }
  0x65   : > { %1847 = vmatpush3.bf16.msra.mxu0 %v1996_v42  ;;  %1887 = vmatpush3.bf16.msra.mxu1 %v1998_v44 }
  0x66   : > { %1848 = vmatprep.subr.bf16.mxu0 %v1999_v45  ;;  %1888 = vmatprep.subr.bf16.mxu1 %v2001_v46 }
  0x67   : > { %712 = vmatmul.mubr.bf16.gmra.mrb[4].mxu0 %v1988_v34  ;;  %785 = vmatmul.mubr.bf16.gmra.mrb[4].mxu1 %v1988_v34 }
  0x68   : > { %721 = vmatprep.mubr.bf16.mxu0 %v2213_v0  ;;  %794 = vmatprep.mubr.bf16.mxu1 %v2213_v0 }
  0x69   : > { %1849 = vmatpush3.bf16.msra.mxu0 %v2000_v47  ;;  %1889 = vmatpush3.bf16.msra.mxu1 %v2002_v48 }
  0x6a   : > { %1850 = vmatprep.subr.bf16.mxu0 %v2003_v49  ;;  %1890 = vmatprep.subr.bf16.mxu1 %v2005_v50 }
  0x6b   : > { %1493 = vperm.xlu1 %1938, %v1455_v12  }
  0x6d   : > { %1851 = vmatpush3.bf16.msra.mxu0 %v2004_v51  ;;  %1891 = vmatpush3.bf16.msra.mxu1 %v2006_v52 }
  0x6e   : > { %1852 = vmatprep.subr.bf16.mxu0 %v2007_v53  ;;  %1892 = vmatprep.subr.bf16.mxu1 %v2009_v54 }
  0x6f   : > { %722 = vmatmul.mubr.bf16.gmra.mrb[8].mxu0 %v1989_v35  ;;  %795 = vmatmul.mubr.bf16.gmra.mrb[8].mxu1 %v1989_v35 }
  0x70   : > { %731 = vmatprep.mubr.bf16.mxu0 %v2213_v0  ;;  %804 = vmatprep.mubr.bf16.mxu1 %v2213_v0  ;;  %v2018_v0 = vld [vmem:[%s2362_s2 + $0xb0] sm:$0xff]  }
  0x71   : > { %1853 = vmatpush3.bf16.msra.mxu0 %v2008_v55  ;;  %1893 = vmatpush3.bf16.msra.mxu1 %v2010_v56 }
  0x72   : > { %1854 = vmatprep.subr.bf16.mxu0 %v2011_v57  ;;  %1894 = vmatprep.subr.bf16.mxu1 %v2013_v58 }
  0x75   : > { %1855 = vmatpush3.bf16.msra.mxu0 %v2012_v59  ;;  %1895 = vmatpush3.bf16.msra.mxu1 %v2014_v60 }
  0x76   : > { %1856 = vmatprep.subr.bf16.mxu0 %v2015_v61  ;;  %1896 = vmatprep.subr.bf16.mxu1 %v2017_v62 }
  0x77   : > { %732 = vmatmul.mubr.bf16.gmra.mrb[12].mxu0 %v1990_v36  ;;  %805 = vmatmul.mubr.bf16.gmra.mrb[12].mxu1 %v1990_v36 }
  0x79   : > { %1857 = vmatpush3.bf16.msra.mxu0 %v2016_v63  ;;  %1897 = vmatpush3.bf16.msra.mxu1 %v2018_v0 }
  0x7a   : > { %1858 = vmatprep.subr.bf16.mxu0 %v2019_v1  ;;  %1898 = vmatprep.subr.bf16.mxu1 %v2021_v2 }
  0x7d   : > { %1859 = vmatpush3.bf16.msra.mxu0 %v2020_v3  ;;  %1899 = vmatpush3.bf16.msra.mxu1 %v2022_v4 }
 0x132   : > { %v703_v24 = vpop.f32.mrb[0].mxu0  ;;  %v776_v25 = vpop.f32.mrb[0].mxu1 }
 0x133   : > { %v2419_v26 = vadd.f32 %v703_v24, %v2410_v20  ;;  %v2422_v27 = vadd.f32 %v776_v25, %v2412_v21  ;;  %v705_v28 = vpop.f32.mrb[1].mxu0  ;;  %v778_v29 = vpop.f32.mrb[1].mxu1 }
 0x134   : > { %v2425_v30 = vadd.f32 %v705_v28, %v2414_v22  ;;  %v2428_v31 = vadd.f32 %v778_v29, %v2416_v23  ;;  %v707_v32 = vpop.f32.mrb[2].mxu0  ;;  %v780_v33 = vpop.f32.mrb[2].mxu1 }
 0x135   : > { %v1775_v34 = vmul.f32 -1.442695, %v2419_v26  ;;  %v1777_v35 = vmul.f32 -1.442695, %v2422_v27  ;;  %v2433_v36 = vadd.f32 %v707_v32, %v2410_v20  ;;  %v2436_v37 = vadd.f32 %v780_v33, %v2412_v21  ;;  %v709_v38 = vpop.f32.mrb[3].mxu0  ;;  %v782_v39 = vpop.f32.mrb[3].mxu1 }
 0x136   : > { %v1776_v40 = vmul.f32 -1.442695, %v2425_v30  ;;  %v1778_v41 = vmul.f32 -1.442695, %v2428_v31  ;;  %v2441_v42 = vadd.f32 %v709_v38, %v2414_v22  ;;  %v2444_v43 = vadd.f32 %v782_v39, %v2416_v23 }
 0x137   : > { %2023 = vpow2.f32 %v1775_v34  ;;  %v1779_v44 = vmul.f32 -1.442695, %v2433_v36  ;;  %v1781_v45 = vmul.f32 -1.442695, %v2436_v37 }
 0x138   : > { %2025 = vpow2.f32 %v1777_v35  ;;  %v1780_v46 = vmul.f32 -1.442695, %v2441_v42  ;;  %v1782_v47 = vmul.f32 -1.442695, %v2444_v43 }
 0x139   : > { %2027 = vpow2.f32 %v1776_v40 }
 0x13a   : > { %2029 = vpow2.f32 %v1778_v41  ;;  %v713_v48 = vpop.f32.mrb[4].mxu0  ;;  %v786_v49 = vpop.f32.mrb[4].mxu1 }
 0x13b   : > { %2031 = vpow2.f32 %v1779_v44  ;;  %v2451_v50 = vadd.f32 %v713_v48, %v2410_v20  ;;  %v2454_v51 = vadd.f32 %v786_v49, %v2412_v21  ;;  %v715_v52 = vpop.f32.mrb[5].mxu0  ;;  %v788_v53 = vpop.f32.mrb[5].mxu1 }
 0x13c   : > { %2033 = vpow2.f32 %v1781_v45  ;;  %v2457_v54 = vadd.f32 %v715_v52, %v2414_v22  ;;  %v2460_v55 = vadd.f32 %v788_v53, %v2416_v23  ;;  %v717_v56 = vpop.f32.mrb[6].mxu0  ;;  %v790_v57 = vpop.f32.mrb[6].mxu1 }
 0x13d   : > { %2035 = vpow2.f32 %v1780_v46  ;;  %v1783_v58 = vmul.f32 -1.442695, %v2451_v50  ;;  %v1785_v59 = vmul.f32 -1.442695, %v2454_v51  ;;  %v2465_v60 = vadd.f32 %v717_v56, %v2410_v20  ;;  %v719_v61 = vpop.f32.mrb[7].mxu0  ;;  %v792_v62 = vpop.f32.mrb[7].mxu1 }
 0x13e   : > { %2037 = vpow2.f32 %v1782_v47  ;;  %v1784_v63 = vmul.f32 -1.442695, %v2457_v54  ;;  %v1786_v0 = vmul.f32 -1.442695, %v2460_v55  ;;  %v2471_v25 = vadd.f32 %v790_v57, %v2412_v21 }
 0x13f   : > { %2039 = vpow2.f32 %v1783_v58  ;;  %v1787_v1 = vmul.f32 -1.442695, %v2465_v60  ;;  %v2474_v33 = vadd.f32 %v719_v61, %v2414_v22  ;;  %v2478_v45 = vadd.f32 %v792_v62, %v2416_v23 }
 0x140   : > { %2041 = vpow2.f32 %v1785_v59  ;;  %v1789_v44 = vmul.f32 -1.442695, %v2471_v25 }
 0x141   : > { %v2024_v2 = vpop.eup %2023  ;;  %2043 = vpow2.f32 %v1784_v63  ;;  %v1788_v49 = vmul.f32 -1.442695, %v2474_v33 }
 0x142   : > { %v2026_v3 = vpop.eup %2025  ;;  %v911_v4 = vadd.f32 1.0, %v2024_v2  ;;  %2045 = vpow2.f32 %v1786_v0  ;;  %v723_v5 = vpop.f32.mrb[8].mxu0 }
 0x143   : > { %v796_v6 = vpop.f32.mrb[8].mxu1  ;;  %v2028_v7 = vpop.eup %2027  ;;  %v913_v8 = vadd.f32 1.0, %v2026_v3  ;;  %2047 = vpow2.f32 %v1787_v1  ;;  %v2482_v52 = vadd.f32 %v723_v5, %v2410_v20 }
 0x144   : > { %v725_v9 = vpop.f32.mrb[9].mxu0  ;;  %v798_v10 = vpop.f32.mrb[9].mxu1  ;;  %2049 = vrcp.f32 %v911_v4  ;;  %v912_v12 = vadd.f32 1.0, %v2028_v7  ;;  %v2487_v59 = vadd.f32 %v796_v6, %v2412_v21 }
 0x145   : > { %v2030_v11 = vpop.eup %2029  ;;  %v727_v13 = vpop.f32.mrb[10].mxu0  ;;  %2051 = vrcp.f32 %v913_v8  ;;  %v2490_v61 = vadd.f32 %v725_v9, %v2414_v22  ;;  %v2497_v2 = vadd.f32 %v798_v10, %v2416_v23 }
 0x146   : > { %v800_v15 = vpop.f32.mrb[10].mxu1  ;;  %v2032_v16 = vpop.eup %2031  ;;  %v914_v17 = vadd.f32 1.0, %v2030_v11  ;;  %2053 = vrcp.f32 %v912_v12  ;;  %v2500_v3 = vadd.f32 %v727_v13, %v2410_v20  ;;  %v1790_v12 = vmul.f32 -1.442695, %v2478_v45 }
 0x147   : > { %v729_v18 = vpop.f32.mrb[11].mxu0  ;;  %v2034_v19 = vpop.eup %2033  ;;  %v915_v24 = vadd.f32 1.0, %v2032_v16  ;;  %v2507_v8 = vadd.f32 %v800_v15, %v2412_v21  ;;  %v1791_v16 = vmul.f32 -1.442695, %v2482_v52  ;;  %v1792_v15 = vmul.f32 -1.442695, %v2490_v61 }
 0x148   : > { %v802_v28 = vpop.f32.mrb[11].mxu1  ;;  %v2036_v29 = vpop.eup %2035  ;;  %2055 = vrcp.f32 %v914_v17  ;;  %v917_v32 = vadd.f32 1.0, %v2034_v19  ;;  %v2510_v9 = vadd.f32 %v729_v18, %v2414_v22  ;;  %v1793_v17 = vmul.f32 -1.442695, %v2487_v59 }
 0x149   : > { %v2038_v34 = vpop.eup %2037  ;;  %2057 = vrcp.f32 %v915_v24  ;;  %v916_v35 = vadd.f32 1.0, %v2036_v29  ;;  %v1794_v24 = vmul.f32 -1.442695, %v2497_v2  ;;  %v2520_v18 = vadd.f32 %v802_v28, %v2416_v23 }
 0x14a   : > { %v2040_v38 = vpop.eup %2039  ;;  %2059 = vrcp.f32 %v917_v32  ;;  %v918_v39 = vadd.f32 1.0, %v2038_v34  ;;  %v733_v46 = vpop.f32.mrb[12].mxu0  ;;  %v1795_v32 = vmul.f32 -1.442695, %v2500_v3  ;;  %v1797_v34 = vmul.f32 -1.442695, %v2507_v8 }
 0x14b   : > { %v2042_v40 = vpop.eup %2041  ;;  %2061 = vrcp.f32 %v916_v35  ;;  %v919_v41 = vadd.f32 1.0, %v2040_v38  ;;  %v806_v53 = vpop.f32.mrb[12].mxu1  ;;  %v1796_v35 = vmul.f32 -1.442695, %v2510_v9 }
 0x14c   : > { %v2044_v47 = vpop.eup %2043  ;;  %2063 = vrcp.f32 %v918_v39  ;;  %v921_v48 = vadd.f32 1.0, %v2042_v40  ;;  %v2484_v56 = vpop.f32.mrb[13].mxu0 }
 0x14d   : > { %v2046_v57 = vpop.eup %2045  ;;  %2065 = vrcp.f32 %v919_v41  ;;  %v920_v58 = vadd.f32 1.0, %v2044_v47  ;;  %v2492_v62 = vpop.f32.mrb[13].mxu1  ;;  %v2528_v41 = vadd.f32 %v733_v46, %v2410_v20 }
 0x14e   : > { %v2494_v63 = vpop.f32.mrb[14].mxu0  ;;  %v2048_v0 = vpop.eup %2047  ;;  %2067 = vrcp.f32 %v921_v48  ;;  %v922_v1 = vadd.f32 1.0, %v2046_v57  ;;  %v2533_v48 = vadd.f32 %v806_v53, %v2412_v21 }
 0x14f   : > { %v2502_v4 = vpop.f32.mrb[14].mxu1  ;;  %v2504_v5 = vpop.f32.mrb[15].mxu0  ;;  %2069 = vrcp.f32 %v920_v58  ;;  %v923_v7 = vadd.f32 1.0, %v2048_v0 }
 0x150   : > { %v2050_v6 = vpop.eup %2049  ;;  %v2512_v11 = vpop.f32.mrb[15].mxu1  ;;  %2071 = vrcp.f32 %v922_v1 }
 0x151   : > { %v2052_v10 = vpop.eup %2051  ;;  %2073 = vrcp.f32 %v923_v7  ;;  %v1007_v39 = vmul.f32 %v2050_v6, %v2419_v26 }
 0x152   : > { %v2054_v13 = vpop.eup %2053  ;;  %2075 = vpow2.f32 %v1789_v44  ;;  %v1009_v28 = vmul.f32 %v2052_v10, %v2422_v27 }
 0x153   : > { %v2056_v19 = vpop.eup %2055  ;;  %2077 = vpow2.f32 %v1788_v49  ;;  %v1008_v57 = vmul.f32 %v2054_v13, %v2425_v30  ;;  %v1799_v30 = vmul.f32 -1.442695, %v2528_v41 }
 0x154   : > { %v2058_v29 = vpop.eup %2057  ;;  %2079 = vpow2.f32 %v1790_v12  ;;  %v1010_v46 = vmul.f32 %v2056_v19, %v2428_v31  ;;  %v1801_v31 = vmul.f32 -1.442695, %v2533_v48 }
 0x155   : > { %v2060_v38 = vpop.eup %2059  ;;  %v1011_v40 = vmul.f32 %v2058_v29, %v2433_v36  ;;  %2081 = vpow2.f32 %v1791_v16 }
 0x156   : > { %v2062_v44 = vpop.eup %2061  ;;  %v1013_v47 = vmul.f32 %v2060_v38, %v2436_v37  ;;  %2083 = vpow2.f32 %v1793_v17  ;;  %v1798_v37 = vmul.f32 -1.442695, %v2520_v18 }
 0x157   : > { %v2064_v49 = vpop.eup %2063  ;;  %v1039_v58 = vpack.c.bf16 %v1011_v40, %v1007_v39  ;;  %v1012_v26 = vmul.f32 %v2062_v44, %v2441_v42  ;;  %2085 = vpow2.f32 %v1792_v15 }
 0x158   : > { %v2066_v36 = vpop.eup %2065  ;;  %v1041_v0 = vpack.c.bf16 %v1013_v47, %v1009_v28  ;;  %v1014_v1 = vmul.f32 %v2064_v49, %v2444_v43  ;;  %2087 = vpow2.f32 %v1794_v24  ;;  %v2558_v49 = vadd.f32 %v2484_v56, %v2414_v22 }
 0x159   : > { %v2539_v27 = vpop.eup %2067  ;;  %v1040_v53 = vpack.c.bf16 %v1012_v26, %v1008_v57  ;;  %2089 = vpow2.f32 %v1795_v32  ;;  %v2549_v12 = vmul.f32 %v2066_v36, %v2451_v50  ;;  %v2562_v26 = vadd.f32 %v2492_v62, %v2416_v23 }
 0x15a   : > { %v2542_v6 = vpop.eup %2069  ;;  %v1042_v42 = vpack.c.bf16 %v1014_v1, %v1010_v46  ;;  %2091 = vpow2.f32 %v1797_v34  ;;  %v2570_v56 = vadd.f32 %v2502_v4, %v2412_v21  ;;  %v1017_v21 = vmul.f32 %v2539_v27, %v2454_v51 }
 0x15b   : > { %v2545_v7 = vpop.eup %2071  ;;  %1350 = vmatprep.mubr.bf16.mxu0 %v1040_v53  ;;  %2093 = vpow2.f32 %v1796_v35  ;;  %v2574_v53 = vadd.f32 %v2504_v5, %v2414_v22 }
 0x15c   : > { %v2074_v43 = vpop.eup %2073  ;;  %1415 = vmatprep.mubr.bf16.mxu1 %v1042_v42  ;;  %1351 = vmatmul.mubr.bf16.vlgmr.msra.gmra.mrb[16].mxu0 %v1039_v58  ;;  %2095 = vpow2.f32 %v1798_v37 }
 0x15d   : > { %v2076_v10 = vpop.eup %2075  ;;  %v2552_v13 = vmul.f32 %v2074_v43, %v2465_v60  ;;  %1416 = vmatmul.mubr.bf16.vlgmr.msra.gmra.mrb[16].mxu1 %v1041_v0  ;;  %2097 = vpow2.f32 %v1799_v30  ;;  %v2566_v0 = vadd.f32 %v2494_v63, %v2410_v20  ;;  %v1800_v30 = vmul.f32 -1.442695, %v2558_v49 }
 0x15e   : > { %v2078_v16 = vpop.eup %2077  ;;  %v925_v17 = vadd.f32 1.0, %v2076_v10  ;;  %2099 = vpow2.f32 %v1801_v31  ;;  %v1802_v20 = vmul.f32 -1.442695, %v2562_v26  ;;  %v2580_v63 = vadd.f32 %v2512_v11, %v2416_v23 }
 0x15f   : > { %v2080_v19 = vpop.eup %2079  ;;  %v924_v15 = vadd.f32 1.0, %v2078_v16  ;;  %v1043_v24 = vpack.c.bf16 %v2552_v13, %v2549_v12  ;;  %v1803_v22 = vmul.f32 -1.442695, %v2566_v0  ;;  %v1016_v43 = vmul.f32 %v2542_v6, %v2457_v54 }
 0x160   : > { %v2082_v29 = vpop.eup %2081  ;;  %2101 = vrcp.f32 %v925_v17  ;;  %v926_v32 = vadd.f32 1.0, %v2080_v19  ;;  %v1805_v16 = vmul.f32 -1.442695, %v2570_v56  ;;  %v1804_v17 = vmul.f32 -1.442695, %v2574_v53 }
 0x161   : > { %v2084_v34 = vpop.eup %2083  ;;  %2103 = vrcp.f32 %v924_v15  ;;  %v927_v50 = vadd.f32 1.0, %v2082_v29  ;;  %v1018_v11 = vmul.f32 %v2545_v7, %v2460_v55  ;;  %v1806_v19 = vmul.f32 -1.442695, %v2580_v63 }
 0x162   : > { %v2086_v35 = vpop.eup %2085  ;;  %2105 = vrcp.f32 %v926_v32  ;;  %v929_v60 = vadd.f32 1.0, %v2084_v34 }
 0x163   : > { %v2088_v38 = vpop.eup %2087  ;;  %2107 = vrcp.f32 %v927_v50  ;;  %v928_v39 = vadd.f32 1.0, %v2086_v35 }
 0x164   : > { %v2090_v40 = vpop.eup %2089  ;;  %2109 = vrcp.f32 %v929_v60  ;;  %v930_v44 = vadd.f32 1.0, %v2088_v38 }
 0x165   : > { %v2092_v28 = vpop.eup %2091  ;;  %2111 = vrcp.f32 %v928_v39  ;;  %v931_v47 = vadd.f32 1.0, %v2090_v40 }
 0x166   : > { %v2094_v57 = vpop.eup %2093  ;;  %2113 = vrcp.f32 %v930_v44  ;;  %v933_v58 = vadd.f32 1.0, %v2092_v28 }
 0x167   : > { %v2096_v36 = vpop.eup %2095  ;;  %2115 = vrcp.f32 %v931_v47  ;;  %v932_v46 = vadd.f32 1.0, %v2094_v57 }
 0x168   : > { %v2098_v1 = vpop.eup %2097  ;;  %2117 = vrcp.f32 %v933_v58  ;;  %v934_v37 = vadd.f32 1.0, %v2096_v36 }
 0x169   : > { %v2100_v62 = vpop.eup %2099  ;;  %2119 = vrcp.f32 %v932_v46  ;;  %v935_v39 = vadd.f32 1.0, %v2098_v1 }
 0x16a   : > { %v2102_v42 = vpop.eup %2101  ;;  %2121 = vrcp.f32 %v934_v37 }
 0x16b   : > { %v2104_v31 = vpop.eup %2103  ;;  %v1021_v4 = vmul.f32 %v2102_v42, %v2471_v25  ;;  %2123 = vpow2.f32 %v1800_v30 }
 0x16c   : > { %v2106_v5 = vpop.eup %2105  ;;  %v1020_v10 = vmul.f32 %v2104_v31, %v2474_v33  ;;  %2125 = vpow2.f32 %v1802_v20 }
 0x16d   : > { %v2108_v23 = vpop.eup %2107  ;;  %v1022_v51 = vmul.f32 %v2106_v5, %v2478_v45  ;;  %v1045_v25 = vpack.c.bf16 %v1021_v4, %v1017_v21  ;;  %2127 = vpow2.f32 %v1803_v22 }
 0x16e   : > { %v2110_v27 = vpop.eup %2109  ;;  %v1044_v15 = vpack.c.bf16 %v1020_v10, %v1016_v43  ;;  %2129 = vpow2.f32 %v1805_v16  ;;  %v1023_v45 = vmul.f32 %v2108_v23, %v2482_v52 }
 0x16f   : > { %v2112_v54 = vpop.eup %2111  ;;  %v1046_v33 = vpack.c.bf16 %v1022_v51, %v1018_v11  ;;  %2131 = vpow2.f32 %v1804_v17  ;;  %v1025_v34 = vmul.f32 %v2110_v27, %v2487_v59 }
 0x170   : > { %v2114_v6 = vpop.eup %2113  ;;  %1358 = vmatprep.mubr.bf16.mxu0 %v1044_v15  ;;  %2133 = vpow2.f32 %v1806_v19  ;;  %v1024_v60 = vmul.f32 %v2112_v54, %v2490_v61 }
 0x171   : > { %v2116_v29 = vpop.eup %2115  ;;  %1423 = vmatprep.mubr.bf16.mxu1 %v1046_v33  ;;  %1359 = vmatmul.mubr.bf16.gmra.mrb[20].mxu0 %v1043_v24  ;;  %v1026_v13 = vmul.f32 %v2114_v6, %v2497_v2  ;;  %v937_v24 = vadd.f32 1.0, %v2100_v62  ;;  %2135 = vrcp.f32 %v935_v39 }
 0x172   : > { %v2118_v55 = vpop.eup %2117  ;;  %v1027_v7 = vmul.f32 %v2116_v29, %v2500_v3  ;;  %1424 = vmatmul.mubr.bf16.gmra.mrb[20].mxu1 %v1045_v25 }
 0x173   : > { %v2120_v32 = vpop.eup %2119  ;;  %v1029_v50 = vmul.f32 %v2118_v55, %v2507_v8  ;;  %2137 = vrcp.f32 %v937_v24 }
 0x174   : > { %v2122_v35 = vpop.eup %2121  ;;  %v1028_v38 = vmul.f32 %v2120_v32, %v2510_v9  ;;  %v1047_v12 = vpack.c.bf16 %v1027_v7, %v1023_v45 }
 0x175   : > { %v1030_v52 = vmul.f32 %v2122_v35, %v2520_v18  ;;  %v1049_v3 = vpack.c.bf16 %v1029_v50, %v1025_v34  ;;  %v2124_v44 = vpop.eup %2123 }
 0x176   : > { %v1048_v40 = vpack.c.bf16 %v1028_v38, %v1024_v60  ;;  %v2126_v47 = vpop.eup %2125  ;;  %v936_v59 = vadd.f32 1.0, %v2124_v44  ;;  %v1469_v38 = vpop.permute.xlu1 %1468 }
 0x177   : > { %v1050_v28 = vpack.c.bf16 %v1030_v52, %v1026_v13  ;;  %v2128_v8 = vpop.eup %2127  ;;  %v938_v61 = vadd.f32 1.0, %v2126_v47 }
 0x178   : > { %1366 = vmatprep.mubr.bf16.mxu0 %v1048_v40  ;;  %v2130_v9 = vpop.eup %2129  ;;  %2139 = vrcp.f32 %v936_v59  ;;  %v939_v57 = vadd.f32 1.0, %v2128_v8 }
 0x179   : > { %1431 = vmatprep.mubr.bf16.mxu1 %v1050_v28  ;;  %1367 = vmatmul.mubr.bf16.gmra.mrb[24].mxu0 %v1047_v12  ;;  %v2132_v2 = vpop.eup %2131  ;;  %2141 = vrcp.f32 %v938_v61  ;;  %v941_v18 = vadd.f32 1.0, %v2130_v9 }
 0x17a   : > { %1432 = vmatmul.mubr.bf16.gmra.mrb[24].mxu1 %v1049_v3  ;;  %v2134_v58 = vpop.eup %2133  ;;  %2143 = vrcp.f32 %v939_v57  ;;  %v940_v36 = vadd.f32 1.0, %v2132_v2 }
 0x17b   : > { %2145 = vrcp.f32 %v941_v18  ;;  %v942_v46 = vadd.f32 1.0, %v2134_v58  ;;  %v2136_v1 = vpop.eup %2135  ;;  %v1474_v18 = vpop.permute.xlu1 %1473 }
 0x17c   : > { %2147 = vrcp.f32 %v940_v36  ;;  %v1031_v31 = vmul.f32 %v2136_v1, %v2528_v41 }
 0x17d   : > { %2149 = vrcp.f32 %v942_v46  ;;  %v2138_v37 = vpop.eup %2137 }
 0x17e   : > { %v1033_v22 = vmul.f32 %v2138_v37, %v2533_v48 }
 0x182   : > { %v2140_v62 = vpop.eup %2139 }
 0x183   : > { %v2142_v30 = vpop.eup %2141  ;;  %v1032_v10 = vmul.f32 %v2140_v62, %v2558_v49  ;;  %v1459_v49 = vpop.permute.xlu0 %1458 }
 0x184   : > { %v2144_v42 = vpop.eup %2143  ;;  %v1034_v23 = vmul.f32 %v2142_v30, %v2562_v26 }
 0x185   : > { %v2146_v20 = vpop.eup %2145  ;;  %v1035_v21 = vmul.f32 %v2144_v42, %v2566_v0 }
 0x186   : > { %v2148_v4 = vpop.eup %2147  ;;  %v1037_v5 = vmul.f32 %v2146_v20, %v2570_v56  ;;  %v2634_v56 = vld [vmem:[%s407_s11] ss:$0 sm:$0xff] }
 0x187   : > { %v2150_v43 = vpop.eup %2149  ;;  %v1036_v16 = vmul.f32 %v2148_v4, %v2574_v53  ;;  %v1051_v17 = vpack.c.bf16 %v1035_v21, %v1031_v31  ;;  %v1464_v32 = vpop.permute.xlu0 %1463 }
 0x188   : > { %v1038_v11 = vmul.f32 %v2150_v43, %v2580_v63  ;;  %v1053_v41 = vpack.c.bf16 %v1037_v5, %v1033_v22 }
 0x189   : > { %v1052_v0 = vpack.c.bf16 %v1036_v16, %v1032_v10 }
 0x18a   : > { %v1054_v51 = vpack.c.bf16 %v1038_v11, %v1034_v23  ;;  %v1484_v11 = vpop.permute.xlu1 %1483 }
 0x18b   : > { %1374 = vmatprep.mubr.bf16.mxu0 %v1052_v0  ;;  %v1479_v16 = vpop.permute.xlu0 %1478 }
 0x18c   : > { %1439 = vmatprep.mubr.bf16.mxu1 %v1054_v51  ;;  %1375 = vmatmul.mubr.bf16.gmra.mrb[28].mxu0 %v1051_v17 }
 0x18d   : > { %1440 = vmatmul.mubr.bf16.gmra.mrb[28].mxu1 %v1053_v41 }
 0x22f   : > { %v1860_v48 = vpop.f32.mrb[16].mxu0 }
 0x230   : > { %v1900_v26 = vpop.f32.mrb[16].mxu1  ;;  %v1861_v53 = vpop.f32.mrb[17].mxu0 }
 0x231   : > { %v1862_v63 = vadd.f32 %v1861_v53, %v1860_v48  ;;  %v1901_v25 = vpop.f32.mrb[17].mxu1  ;;  %v1863_v27 = vpop.f32.mrb[18].mxu0 }
 0x232   : > { %v1902_v19 = vadd.f32 %v1901_v25, %v1900_v26  ;;  %v1903_v15 = vpop.f32.mrb[18].mxu1  ;;  %v1864_v54 = vpop.f32.mrb[19].mxu0 }
 0x233   : > { %v1353_v33 = vadd.f32 %v1862_v63, %v2634_v56  ;;  %v1865_v6 = vadd.f32 %v1864_v54, %v1863_v27  ;;  %v1904_v29 = vpop.f32.mrb[19].mxu1 }
 0x234   : > { %v1905_v55 = vadd.f32 %v1904_v29, %v1903_v15 }
 0x235   : > { %v1356_v45 = vadd.f32 %v1865_v6, %v2634_v56  ;;  %v1418_v7 = vadd.f32 %v1902_v19, %v1353_v33 }
 0x237   : > { %v2638_v34 = vmul.f32 %v1459_v49, %v1418_v7  ;;  %v1421_v50 = vadd.f32 %v1905_v55, %v1356_v45  ;;  %v1489_v55 = vpop.permute.xlu0 %1488 }
 0x239   : > { %v2640_v35 = vmul.f32 %v1464_v32, %v1421_v50  ;;  %v1494_v32 = vpop.permute.xlu1 %1493  ;;  %1511 = vst [vmem:[%s2308_s0] sm:$0xff] (!%p2626_p3), %v2638_v34 }
 0x23b   : > { %1512 = vst [vmem:[%s2308_s0 + $0x8] sm:$0xff] (!%p2626_p3), %v2640_v35 }
 0x244   : > { %v1866_v60 = vpop.f32.mrb[20].mxu0 }
 0x245   : > { %v1906_v39 = vpop.f32.mrb[20].mxu1  ;;  %v1867_v12 = vpop.f32.mrb[21].mxu0 }
 0x246   : > { %v1868_v13 = vadd.f32 %v1867_v12, %v1866_v60  ;;  %v1907_v52 = vpop.f32.mrb[21].mxu1  ;;  %v1869_v24 = vpop.f32.mrb[22].mxu0 }
 0x247   : > { %v1908_v3 = vadd.f32 %v1907_v52, %v1906_v39  ;;  %v1909_v40 = vpop.f32.mrb[22].mxu1  ;;  %v1870_v44 = vpop.f32.mrb[23].mxu0 }
 0x248   : > { %v1361_v28 = vadd.f32 %v1868_v13, %v2634_v56  ;;  %v1871_v47 = vadd.f32 %v1870_v44, %v1869_v24  ;;  %v1910_v59 = vpop.f32.mrb[23].mxu1 }
 0x249   : > { %v1911_v8 = vadd.f32 %v1910_v59, %v1909_v40 }
 0x24a   : > { %v1426_v61 = vadd.f32 %v1908_v3, %v1361_v28  ;;  %v1364_v9 = vadd.f32 %v1871_v47, %v2634_v56 }
 0x24c   : > { %v2644_v57 = vmul.f32 %v1469_v38, %v1426_v61  ;;  %v1429_v2 = vadd.f32 %v1911_v8, %v1364_v9  ;;  %v1872_v58 = vpop.f32.mrb[24].mxu0 }
 0x24d   : > { %v1912_v36 = vpop.f32.mrb[24].mxu1  ;;  %v1873_v46 = vpop.f32.mrb[25].mxu0 }
 0x24e   : > { %v2646_v1 = vmul.f32 %v1474_v18, %v1429_v2  ;;  %v1874_v37 = vadd.f32 %v1873_v46, %v1872_v58  ;;  %v1913_v62 = vpop.f32.mrb[25].mxu1  ;;  %v1875_v30 = vpop.f32.mrb[26].mxu0  ;;  %1513 = vst [vmem:[%s2308_s0 + $0x10] sm:$0xff] (!%p2626_p3), %v2644_v57 }
 0x24f   : > { %v1914_v42 = vadd.f32 %v1913_v62, %v1912_v36  ;;  %v1915_v20 = vpop.f32.mrb[26].mxu1  ;;  %v1876_v31 = vpop.f32.mrb[27].mxu0 }
 0x250   : > { %v1369_v21 = vadd.f32 %v1874_v37, %v2634_v56  ;;  %v1877_v4 = vadd.f32 %v1876_v31, %v1875_v30  ;;  %v1916_v22 = vpop.f32.mrb[27].mxu1  ;;  %1514 = vst [vmem:[%s2308_s0 + $0x18] sm:$0xff] (!%p2626_p3), %v2646_v1 }
 0x251   : > { %v1917_v5 = vadd.f32 %v1916_v22, %v1915_v20 }
 0x252   : > { %v1434_v43 = vadd.f32 %v1914_v42, %v1369_v21  ;;  %v1372_v10 = vadd.f32 %v1877_v4, %v2634_v56 }
 0x254   : > { %v2650_v17 = vmul.f32 %v1479_v16, %v1434_v43  ;;  %v1437_v23 = vadd.f32 %v1917_v5, %v1372_v10 }
 0x256   : > { %v2652_v41 = vmul.f32 %v1484_v11, %v1437_v23  ;;  %1515 = vst [vmem:[%s2308_s0 + $0x20] sm:$0xff] (!%p2626_p3), %v2650_v17 }
 0x258   : > { %1516 = vst [vmem:[%s2308_s0 + $0x28] sm:$0xff] (!%p2626_p3), %v2652_v41 }
 0x25f   : > { %v1878_v0 = vpop.f32.mrb[28].mxu0 }
 0x260   : > { %v1918_v51 = vpop.f32.mrb[28].mxu1  ;;  %v1879_v48 = vpop.f32.mrb[29].mxu0 }
 0x261   : > { %v1880_v49 = vadd.f32 %v1879_v48, %v1878_v0  ;;  %v1919_v26 = vpop.f32.mrb[29].mxu1  ;;  %v1881_v53 = vpop.f32.mrb[30].mxu0 }
 0x262   : > { %v1920_v63 = vadd.f32 %v1919_v26, %v1918_v51  ;;  %v1921_v25 = vpop.f32.mrb[30].mxu1  ;;  %v1882_v27 = vpop.f32.mrb[31].mxu0 }
 0x263   : > { %v1377_v19 = vadd.f32 %v1880_v49, %v2634_v56  ;;  %v1883_v15 = vadd.f32 %v1882_v27, %v1881_v53  ;;  %v1922_v54 = vpop.f32.mrb[31].mxu1  ;;  %1510 = sbr.rel (%p2626_p3) target bundleno = 620 (0x26c), region = 48 }
 0x264   : > { %v1923_v33 = vadd.f32 %v1922_v54, %v1921_v25 }
 0x265   : > { %v1442_v6 = vadd.f32 %v1920_v63, %v1377_v19  ;;  %v1380_v29 = vadd.f32 %v1883_v15, %v2634_v56 }
 0x267   : > { %v2656_v45 = vmul.f32 %v1489_v55, %v1442_v6  ;;  %v1445_v7 = vadd.f32 %v1923_v33, %v1380_v29 }
 0x269   : > { %v2658_v50 = vmul.f32 %v1494_v32, %v1445_v7  ;;  %1517 = vst [vmem:[%s2308_s0 + $0x30] sm:$0xff] (!%p2626_p3), %v2656_v45 }
 0x26b   : > { %1518 = vst [vmem:[%s2308_s0 + $0x38] sm:$0xff] %v2658_v50 }
 0x26c PF: > { %1521 = sbr.rel (!%p2626_p3) target bundleno = 634 (0x27a), region = 52  ;;  %v1531_v56 = vstv (%p2626_p3), %s2620_s25  ;;  %v1540_v60 = vstv (%p2626_p3), %s2616_s23  ;;  %v1549_v38 = vstv (%p2626_p3), %s2618_s24  ;;  %v1524_v39 = vadd.s32 (%p2626_p3), 8, %v2401_v14  ;;  %v1566_v3 = vld [vmem:[%s2308_s0] sm:$0xff] (%p2626_p3) }
 0x26d   : > { %v1532_v12 = vadd.s32 (%p2626_p3), %v1531_v56, %v2401_v14  ;;  %v1525_v13 = vadd.s32 (%p2626_p3), 16, %v2401_v14  ;;  %v1526_v52 = vadd.s32 (%p2626_p3), 24, %v2401_v14  ;;  %v1527_v24 = vadd.s32 (%p2626_p3), 32, %v2401_v14  ;;  %v1567_v59 = vld [vmem:[%s2308_s0 + $0x8] sm:$0xff] (%p2626_p3)  ;;  %v1568_v9 = vld [vmem:[%s2308_s0 + $0x10] sm:$0xff] (%p2626_p3)  ;;  %v1570_v46 = vld [vmem:[%s2308_s0 + $0x20] sm:$0xff] (%p2626_p3) }
 0x26e   : > { %v1533_v40 = vadd.s32 (%p2626_p3), %v1531_v56, %v1524_v39  ;;  %v1528_v44 = vadd.s32 (%p2626_p3), 40, %v2401_v14  ;;  %v1529_v28 = vadd.s32 (%p2626_p3), 48, %v2401_v14  ;;  %v1530_v47 = vadd.s32 (%p2626_p3), 56, %v2401_v14  ;;  %v1569_v14 = vld [vmem:[%s2308_s0 + $0x18] sm:$0xff] (%p2626_p3)  ;;  %v1571_v37 = vld [vmem:[%s2308_s0 + $0x28] sm:$0xff] (%p2626_p3) }
 0x26f   : > { %vm1541_vm0 = vcmp.ge.s32.totalorder (%p2626_p3), %v1532_v12, %v1540_v60  ;;  %vm1550_vm1 = vcmp.lt.s32.totalorder (%p2626_p3), %v1532_v12, %v1549_v38  ;;  %v1534_v8 = vadd.s32 (%p2626_p3), %v1531_v56, %v1525_v13  ;;  %v1535_v61 = vadd.s32 (%p2626_p3), %v1531_v56, %v1526_v52 }
 0x270   : > { %vm1558_vm2 = vmand (%p2626_p3), %vm1541_vm0, %vm1550_vm1  ;;  %vm1542_vm3 = vcmp.ge.s32.totalorder (%p2626_p3), %v1533_v40, %v1540_v60  ;;  %vm1551_vm4 = vcmp.lt.s32.totalorder (%p2626_p3), %v1533_v40, %v1549_v38  ;;  %v1536_v2 = vadd.s32 (%p2626_p3), %v1531_v56, %v1527_v24  ;;  %v1537_v18 = vadd.s32 (%p2626_p3), %v1531_v56, %v1528_v44 }
 0x271   : > { %v1590_v58 = vsel (%p2626_p3), %vm1558_vm2, %v2638_v34, %v1566_v3  ;;  %vm1559_vm5 = vmand (%p2626_p3), %vm1542_vm3, %vm1551_vm4  ;;  %vm1543_vm6 = vcmp.ge.s32.totalorder (%p2626_p3), %v1534_v8, %v1540_v60  ;;  %vm1552_vm7 = vcmp.lt.s32.totalorder (%p2626_p3), %v1534_v8, %v1549_v38  ;;  %vm1544_vm8 = vcmp.ge.s32.totalorder (%p2626_p3), %v1535_v61, %v1540_v60 }
 0x272   : > { %1598 = vst [vmem:[%s2308_s0] sm:$0xff] (%p2626_p3), %v1590_v58  ;;  %v1591_v36 = vsel (%p2626_p3), %vm1559_vm5, %v2640_v35, %v1567_v59  ;;  %vm1560_vm9 = vmand (%p2626_p3), %vm1543_vm6, %vm1552_vm7  ;;  %vm1553_vm10 = vcmp.lt.s32.totalorder (%p2626_p3), %v1535_v61, %v1549_v38  ;;  %vm1545_vm11 = vcmp.ge.s32.totalorder (%p2626_p3), %v1536_v2, %v1540_v60  ;;  %vm1554_vm12 = vcmp.lt.s32.totalorder (%p2626_p3), %v1536_v2, %v1549_v38  ;;  %v1572_v30 = vld [vmem:[%s2308_s0 + $0x30] sm:$0xff] (%p2626_p3) }
 0x273   : > { %1599 = vst [vmem:[%s2308_s0 + $0x8] sm:$0xff] %v1591_v36  ;;  %v1592_v34 = vsel %vm1560_vm9, %v2644_v57, %v1568_v9  ;;  %vm1561_vm13 = vmand %vm1544_vm8, %vm1553_vm10  ;;  %vm1546_vm14 = vcmp.ge.s32.totalorder %v1537_v18, %v1540_v60  ;;  %vm1555_vm15 = vcmp.lt.s32.totalorder %v1537_v18, %v1549_v38  ;;  %v1538_v62 = vadd.s32 %v1531_v56, %v1529_v28  ;;  %v1573_v57 = vld [vmem:[%s2308_s0 + $0x38] sm:$0xff] }
 0x274   : > { %1600 = vst [vmem:[%s2308_s0 + $0x10] sm:$0xff] %v1592_v34  ;;  %v1593_v35 = vsel %vm1561_vm13, %v2646_v1, %v1569_v14  ;;  %vm1562_vm0 = vmand %vm1545_vm11, %vm1554_vm12  ;;  %v1539_v42 = vadd.s32 %v1531_v56, %v1530_v47 }
 0x275   : > { %1601 = vst [vmem:[%s2308_s0 + $0x18] sm:$0xff] %v1593_v35  ;;  %v1594_v20 = vsel %vm1562_vm0, %v2650_v17, %v1570_v46  ;;  %vm1563_vm1 = vmand %vm1546_vm14, %vm1555_vm15  ;;  %vm1547_vm2 = vcmp.ge.s32.totalorder %v1538_v62, %v1540_v60  ;;  %vm1556_vm3 = vcmp.lt.s32.totalorder %v1538_v62, %v1549_v38 }
 0x276   : > { %1602 = vst [vmem:[%s2308_s0 + $0x20] sm:$0xff] %v1594_v20  ;;  %v1595_v31 = vsel %vm1563_vm1, %v2652_v41, %v1571_v37  ;;  %vm1564_vm4 = vmand %vm1547_vm2, %vm1556_vm3  ;;  %vm1548_vm5 = vcmp.ge.s32.totalorder %v1539_v42, %v1540_v60  ;;  %vm1557_vm6 = vcmp.lt.s32.totalorder %v1539_v42, %v1549_v38 }
 0x277   : > { %1603 = vst [vmem:[%s2308_s0 + $0x28] sm:$0xff] %v1595_v31  ;;  %v1596_v1 = vsel %vm1564_vm4, %v2656_v45, %v1572_v30  ;;  %vm1565_vm7 = vmand %vm1548_vm5, %vm1557_vm6 }
 0x278   : > { %1604 = vst [vmem:[%s2308_s0 + $0x30] sm:$0xff] %v1596_v1  ;;  %v1597_v21 = vsel %vm1565_vm7, %v2658_v50, %v1573_v57 }
 0x279   : > { %1605 = vst [vmem:[%s2308_s0 + $0x38] sm:$0xff] %v1597_v21 }
 0x27a PF: > { %s38_s3 = sadd.s32 1, %s2207_s3  }
 0x27b   : > { %p35_p5 = scmp.ge.s32.totalorder %s38_s3, 12  }
 0x27d   :  { %37 = sbr.rel (!%p35_p5) target bundleno = 47 (0x2f), region = 97 }

</bundles_post_ra>
